<compile_context>
chip_gen: v6e
topology: v6e:2x2x1
jax: 0.10.0
libtpu: 0.0.40
codegen_flags: <defaults>
</compile_context>

<pallas_src>
import jax
import jax.numpy as jnp
from jax.experimental import pallas as pl
from jax.experimental.pallas import tpu as pltpu


# ----------------------------------------------------------------------------
# Kernel
# ----------------------------------------------------------------------------
def _make_kernel(num_fc2):
    def kernel(*refs):
        x_ref = refs[0]                               # (bn, d)
        w1_ref = refs[1]                              # (d, d*m1) masked+fused fc1
        b1_ref = refs[2]                              # (1, d*m1)
        w2_refs = refs[3:3 + num_fc2]                 # block-diag fc2 weights
        b2_refs = refs[3 + num_fc2:3 + 2 * num_fc2]   # (1, d*K*out_l)
        w3_ref = refs[3 + 2 * num_fc2]                # (d*K, d) block fc3
        out_ref = refs[3 + 2 * num_fc2 + 1]           # (bn, d) last_x tile

        # fc1 (masking folded into weights): one (bn,d) x (d,d*m1) matmul.
        h = jnp.dot(x_ref[...], w1_ref[...],
                    preferred_element_type=jnp.float32) + b1_ref[...]

        # fc2: sigmoid (EUP) then one block-diagonal matmul (MXU) per layer.
        for l in range(num_fc2):
            h = jax.nn.sigmoid(h)
            h = jnp.dot(h, w2_refs[l][...],
                        preferred_element_type=jnp.float32) + b2_refs[l][...]

        # fc3: block-structured matmul -> (bn, d) written directly.
        out_ref[...] = jnp.dot(h, w3_ref[...],
                               preferred_element_type=jnp.float32)

    return kernel


# ----------------------------------------------------------------------------
# Wrapper-side weight fusion (done once, outside the hot path)
# ----------------------------------------------------------------------------
def build_fused_params(params, dims, K):
    w1, b1, fc2_w, fc2_b, w3 = params
    d, m1 = dims[0], dims[1]
    num_fc2 = len(dims) - 2

    # fc1: fold the per-column masking into the weights and concatenate blocks.
    # w1[j] is the (d_in, m1) weight of (fc1_pos[j] - fc1_neg[j]); zeroing input
    # column j is equivalent to zeroing row j of block j.
    jidx = jnp.arange(d)
    keep = (jidx[:, None] != jidx[None, :]).astype(w1.dtype)[:, :, None]  # (d_j, d_in, 1)
    w1_masked = w1 * keep
    W1m = jnp.transpose(w1_masked, (1, 0, 2)).reshape(d, d * m1)          # (d_in, d*m1)
    b1f = b1.reshape(1, d * m1)

    # fc2: block-diagonal weights over (column j, local-linear k).
    W2bd, b2f = [], []
    for l in range(num_fc2):
        in_f, out_f = dims[l + 1], dims[l + 2]
        wl, bl = fc2_w[l], fc2_b[l]                   # (K, in, out), (K, out)
        if l == 0:
            # Input is identical across k -> absorb the K-broadcast: (m1, K*out).
            blk = jnp.transpose(wl, (1, 0, 2)).reshape(in_f, K * out_f)
        else:
            eyeK = jnp.eye(K, dtype=wl.dtype)
            blk = (wl[:, :, None, :] * eyeK[:, None, :, None]
                   ).reshape(K * in_f, K * out_f)     # block-diag over k
        W2bd.append(jnp.kron(jnp.eye(d, dtype=wl.dtype), blk))
        b2f.append(jnp.tile(bl.reshape(K * out_f), d).reshape(1, d * K * out_f))

    # fc3: block-structured (d*K, d) (or (d, d) if there are no fc2 layers,
    # in which case the K-broadcast collapses to a row-sum).
    if num_fc2 == 0:
        w3_big = jnp.diag(jnp.sum(w3, axis=1))
    else:
        w3_big = (w3[:, :, None] * jnp.eye(d, dtype=w3.dtype)[:, None, :]
                  ).reshape(d * K, d)

    return W1m, b1f, W2bd, b2f, w3_big


def scalable_dag_last_x(x, params, dims, K, block_n=128):
    """Computes last_x (the hot path of ScalableDAG_v1_4.forward), batch-tiled."""
    assert len(dims) >= 2 and dims[-1] == 1
    n, d = x.shape
    num_fc2 = len(dims) - 2
    W1m, b1f, W2bd, b2f, w3_big = build_fused_params(params, dims, K)

    # Row tile: sublane-aligned, capped at block_n; zero-pad the batch to fit.
    bn = min(block_n, ((n + 7) // 8) * 8)
    n_pad = ((n + bn - 1) // bn) * bn
    x_p = jnp.pad(x, ((0, n_pad - n), (0, 0))) if n_pad != n else x
    grid = (n_pad // bn,)

    weights = [W1m, b1f] + list(W2bd) + list(b2f) + [w3_big]
    full_blk = lambda i: (0, 0)   # all fused weights are small 2-D, resident every step
    in_specs = [pl.BlockSpec((bn, d), lambda i: (i, 0))]
    in_specs += [pl.BlockSpec(w.shape, full_blk) for w in weights]

    out = pl.pallas_call(
        _make_kernel(num_fc2),
        out_shape=jax.ShapeDtypeStruct((n_pad, d), jnp.float32),
        grid_spec=pltpu.PrefetchScalarGridSpec(
            num_scalar_prefetch=0,
            grid=grid,
            in_specs=in_specs,
            out_specs=pl.BlockSpec((bn, d), lambda i: (i, 0)),
        ),
        compiler_params=pltpu.CompilerParams(
            dimension_semantics=("parallel",)),
    )(x_p, *weights)
    return out[:n] if n_pad != n else out


def scalable_dag_forward(x, params, dims, K):
    """Matches ScalableDAG_v1_4.forward: computes last_x, returns x unchanged."""
    last_x = scalable_dag_last_x(x, params, dims, K)
    return x, last_x


# ----------------------------------------------------------------------------
# Synthetic parameters (shapes per ScalableDAG_v1_4.__init__) and a pure-JAX
# reference that mirrors the torch loop (for correctness checking).
# ----------------------------------------------------------------------------
def init_params(key, dims, K):
    d, m1 = dims[0], dims[1]
    ks = jax.random.split(key, 6)

    def u(k, shape, fan_in):
        b = 1.0 / jnp.sqrt(jnp.float32(fan_in))
        return jax.random.uniform(k, shape, jnp.float32, -b, b)

    # fc1_pos / fc1_neg: d independent Linear(d, m1, bias=True)
    w_pos = u(ks[0], (d, m1, d), d)
    w_neg = u(ks[1], (d, m1, d), d)
    b_pos = u(ks[2], (d, m1), d)
    b_neg = u(ks[3], (d, m1), d)
    w1 = jnp.transpose(w_pos - w_neg, (0, 2, 1))      # (d, d_in, m1)
    b1 = b_pos - b_neg                                # (d, m1)

    # fc2: LocallyConnected(K, dims[l+1], dims[l+2], bias=True)
    num_fc2 = len(dims) - 2
    kk = jax.random.split(ks[4], max(1, 2 * num_fc2))
    fc2_w, fc2_b = [], []
    for l in range(num_fc2):
        in_f, out_f = dims[l + 1], dims[l + 2]
        fc2_w.append(u(kk[2 * l], (K, in_f, out_f), in_f))
        fc2_b.append(u(kk[2 * l + 1], (K, out_f), in_f))

    # fc3: d independent Linear(K, 1, bias=False) -> stacked (d, K)
    w3 = u(ks[5], (d, K), K)
    return w1, b1, fc2_w, fc2_b, w3


def reference_last_x(x, params, dims, K):
    """Direct (unfused) JAX translation of the torch per-column loop."""
    w1, b1, fc2_w, fc2_b, w3 = params
    n, d = x.shape
    m1 = dims[1]
    cols = []
    for j in range(d):
        x_phi = x.at[:, j].set(0.0)
        h = x_phi @ w1[j] + b1[j]                              # (n, m1)
        h = jnp.broadcast_to(h[:, None, :], (n, K, m1))        # expand over K
        for l in range(len(dims) - 2):
            h = jax.nn.sigmoid(h)
            h = jnp.einsum('nki,kio->nko', h, fc2_w[l]) + fc2_b[l][None, :, :]
        h = h[:, :, 0]                                         # squeeze(dim=2)
        cols.append(h @ w3[j])                                 # fc3_j, (n,)
    return jnp.stack(cols, axis=1)                             # (n, d)


# ----------------------------------------------------------------------------
if __name__ == "__main__":
    dims = [8, 16, 8, 1]     # [d, m1, m2, 1]; d*m1 = 128 = one full lane width
    K = 8
    n = 200                  # batch (exercises row tiling + zero-pad path)
    d = dims[0]

    key = jax.random.PRNGKey(0)
    kx, kp = jax.random.split(key)
    x = jax.random.normal(kx, (n, d), dtype=jnp.float32)
    params = init_params(kp, dims, K)

    out_x, last_x = scalable_dag_forward(x, params, dims, K)
    jax.block_until_ready(last_x)
    jax.block_until_ready(out_x)

    assert out_x.shape == (n, d)
    assert last_x.shape == (n, d)
    assert bool(jnp.all(out_x == x))   # forward returns its input, like torch

    ref = reference_last_x(x, params, dims, K)
    err = float(jnp.max(jnp.abs(last_x - ref)))
    assert err < 2e-4, f"last_x mismatch vs reference: max abs err {err}"

    print("KERNEL_OK")
</pallas_src>

<mosaic_0001>
module attributes {stable_mosaic.version = 11 : i64} {
  func.func @kernel(%arg0: i32, %arg1: memref<128x8xf32, #tpu.memory_space<vmem>>, %arg2: memref<8x128xf32, #tpu.memory_space<vmem>>, %arg3: memref<1x128xf32, #tpu.memory_space<vmem>>, %arg4: memref<128x512xf32, #tpu.memory_space<vmem>>, %arg5: memref<512x64xf32, #tpu.memory_space<vmem>>, %arg6: memref<1x512xf32, #tpu.memory_space<vmem>>, %arg7: memref<1x64xf32, #tpu.memory_space<vmem>>, %arg8: memref<64x8xf32, #tpu.memory_space<vmem>>, %arg9: memref<128x8xf32, #tpu.memory_space<vmem>>) attributes {dimension_semantics = [#tpu.dimension_semantics<parallel>], iteration_bounds = array<i64: 2>, scalar_prefetch = 0 : i64, scratch_operands = 0 : i64, tpu.core_type = #tpu.core_type<tc>, window_params = [{transform_indices = @transform_0, window_bounds = array<i64: 128, 8>}, {pipeline_mode = #tpu.pipeline_mode<synchronous>, transform_indices = @transform_1, window_bounds = array<i64: 8, 128>}, {pipeline_mode = #tpu.pipeline_mode<synchronous>, transform_indices = @transform_2, window_bounds = array<i64: 1, 128>}, {pipeline_mode = #tpu.pipeline_mode<synchronous>, transform_indices = @transform_3, window_bounds = array<i64: 128, 512>}, {pipeline_mode = #tpu.pipeline_mode<synchronous>, transform_indices = @transform_4, window_bounds = array<i64: 512, 64>}, {pipeline_mode = #tpu.pipeline_mode<synchronous>, transform_indices = @transform_5, window_bounds = array<i64: 1, 512>}, {pipeline_mode = #tpu.pipeline_mode<synchronous>, transform_indices = @transform_6, window_bounds = array<i64: 1, 64>}, {pipeline_mode = #tpu.pipeline_mode<synchronous>, transform_indices = @transform_7, window_bounds = array<i64: 64, 8>}, {transform_indices = @transform_8, window_bounds = array<i64: 128, 8>}]} {
    %c0 = arith.constant 0 : index
    %c0_0 = arith.constant 0 : index
    %0 = vector.load %arg1[%c0, %c0_0] : memref<128x8xf32, #tpu.memory_space<vmem>>, vector<128x8xf32>
    %c0_1 = arith.constant 0 : index
    %c0_2 = arith.constant 0 : index
    %1 = vector.load %arg2[%c0_1, %c0_2] : memref<8x128xf32, #tpu.memory_space<vmem>>, vector<8x128xf32>
    %cst = arith.constant dense<0.000000e+00> : vector<128x128xf32>
    %2 = tpu.matmul %0, %1, %cst {dimension_numbers = #tpu.dot_dimension_numbers<[1], [0], [0], [1], [0, 0, 1, 1], [], []>} : vector<128x8xf32>, vector<8x128xf32>, vector<128x128xf32> -> vector<128x128xf32>
    %c0_3 = arith.constant 0 : index
    %c0_4 = arith.constant 0 : index
    %3 = vector.load %arg3[%c0_3, %c0_4] : memref<1x128xf32, #tpu.memory_space<vmem>>, vector<1x128xf32>
    %4 = vector.broadcast %3 : vector<1x128xf32> to vector<128x128xf32>
    %5 = arith.addf %2, %4 : vector<128x128xf32>
    %6 = arith.negf %5 : vector<128x128xf32>
    %7 = math.exp %6 : vector<128x128xf32>
    %cst_5 = arith.constant 1.000000e+00 : f32
    %8 = vector.broadcast %cst_5 : f32 to vector<128x128xf32>
    %9 = arith.addf %8, %7 : vector<128x128xf32>
    %10 = arith.divf %8, %9 : vector<128x128xf32>
    %c0_6 = arith.constant 0 : index
    %c0_7 = arith.constant 0 : index
    %11 = vector.load %arg4[%c0_6, %c0_7] : memref<128x512xf32, #tpu.memory_space<vmem>>, vector<128x512xf32>
    %cst_8 = arith.constant dense<0.000000e+00> : vector<128x512xf32>
    %12 = tpu.matmul %10, %11, %cst_8 {dimension_numbers = #tpu.dot_dimension_numbers<[1], [0], [0], [1], [0, 0, 1, 1], [], []>} : vector<128x128xf32>, vector<128x512xf32>, vector<128x512xf32> -> vector<128x512xf32>
    %c0_9 = arith.constant 0 : index
    %c0_10 = arith.constant 0 : index
    %13 = vector.load %arg6[%c0_9, %c0_10] : memref<1x512xf32, #tpu.memory_space<vmem>>, vector<1x512xf32>
    %14 = vector.broadcast %13 : vector<1x512xf32> to vector<128x512xf32>
    %15 = arith.addf %12, %14 : vector<128x512xf32>
    %16 = arith.negf %15 : vector<128x512xf32>
    %17 = math.exp %16 : vector<128x512xf32>
    %cst_11 = arith.constant 1.000000e+00 : f32
    %18 = vector.broadcast %cst_11 : f32 to vector<128x512xf32>
    %19 = arith.addf %18, %17 : vector<128x512xf32>
    %20 = arith.divf %18, %19 : vector<128x512xf32>
    %c0_12 = arith.constant 0 : index
    %c0_13 = arith.constant 0 : index
    %21 = vector.load %arg5[%c0_12, %c0_13] : memref<512x64xf32, #tpu.memory_space<vmem>>, vector<512x64xf32>
    %cst_14 = arith.constant dense<0.000000e+00> : vector<128x64xf32>
    %22 = tpu.matmul %20, %21, %cst_14 {dimension_numbers = #tpu.dot_dimension_numbers<[1], [0], [0], [1], [0, 0, 1, 1], [], []>} : vector<128x512xf32>, vector<512x64xf32>, vector<128x64xf32> -> vector<128x64xf32>
    %c0_15 = arith.constant 0 : index
    %c0_16 = arith.constant 0 : index
    %23 = vector.load %arg7[%c0_15, %c0_16] : memref<1x64xf32, #tpu.memory_space<vmem>>, vector<1x64xf32>
    %24 = vector.broadcast %23 : vector<1x64xf32> to vector<128x64xf32>
    %25 = arith.addf %22, %24 : vector<128x64xf32>
    %c0_17 = arith.constant 0 : index
    %c0_18 = arith.constant 0 : index
    %26 = vector.load %arg8[%c0_17, %c0_18] : memref<64x8xf32, #tpu.memory_space<vmem>>, vector<64x8xf32>
    %cst_19 = arith.constant dense<0.000000e+00> : vector<128x8xf32>
    %27 = tpu.matmul %25, %26, %cst_19 {dimension_numbers = #tpu.dot_dimension_numbers<[1], [0], [0], [1], [0, 0, 1, 1], [], []>} : vector<128x64xf32>, vector<64x8xf32>, vector<128x8xf32> -> vector<128x8xf32>
    %c0_20 = arith.constant 0 : index
    %c0_21 = arith.constant 0 : index
    %28 = vector.load %arg9[%c0_20, %c0_21] : memref<128x8xf32, #tpu.memory_space<vmem>>, vector<128x8xf32>
    tpu.vector_store %arg9[%c0_20, %c0_21], %27 {strides = array<i32>} : memref<128x8xf32, #tpu.memory_space<vmem>>, vector<128x8xf32>,
    return
  }
  func.func @transform_0(%arg0: i32) -> (i32, i32) {
    %c0_i32 = arith.constant 0 : i32
    %c0_i32_0 = arith.constant 0 : i32
    return %arg0, %c0_i32 : i32, i32
  }
  func.func @transform_1(%arg0: i32) -> (i32, i32) {
    %c0_i32 = arith.constant 0 : i32
    %c0_i32_0 = arith.constant 0 : i32
    %c0_i32_1 = arith.constant 0 : i32
    return %c0_i32, %c0_i32_0 : i32, i32
  }
  func.func @transform_2(%arg0: i32) -> (i32, i32) {
    %c0_i32 = arith.constant 0 : i32
    %c0_i32_0 = arith.constant 0 : i32
    %c0_i32_1 = arith.constant 0 : i32
    return %c0_i32, %c0_i32_0 : i32, i32
  }
  func.func @transform_3(%arg0: i32) -> (i32, i32) {
    %c0_i32 = arith.constant 0 : i32
    %c0_i32_0 = arith.constant 0 : i32
    %c0_i32_1 = arith.constant 0 : i32
    return %c0_i32, %c0_i32_0 : i32, i32
  }
  func.func @transform_4(%arg0: i32) -> (i32, i32) {
    %c0_i32 = arith.constant 0 : i32
    %c0_i32_0 = arith.constant 0 : i32
    %c0_i32_1 = arith.constant 0 : i32
    return %c0_i32, %c0_i32_0 : i32, i32
  }
  func.func @transform_5(%arg0: i32) -> (i32, i32) {
    %c0_i32 = arith.constant 0 : i32
    %c0_i32_0 = arith.constant 0 : i32
    %c0_i32_1 = arith.constant 0 : i32
    return %c0_i32, %c0_i32_0 : i32, i32
  }
  func.func @transform_6(%arg0: i32) -> (i32, i32) {
    %c0_i32 = arith.constant 0 : i32
    %c0_i32_0 = arith.constant 0 : i32
    %c0_i32_1 = arith.constant 0 : i32
    return %c0_i32, %c0_i32_0 : i32, i32
  }
  func.func @transform_7(%arg0: i32) -> (i32, i32) {
    %c0_i32 = arith.constant 0 : i32
    %c0_i32_0 = arith.constant 0 : i32
    %c0_i32_1 = arith.constant 0 : i32
    return %c0_i32, %c0_i32_0 : i32, i32
  }
  func.func @transform_8(%arg0: i32) -> (i32, i32) {
    %c0_i32 = arith.constant 0 : i32
    %c0_i32_0 = arith.constant 0 : i32
    return %arg0, %c0_i32 : i32, i32
  }
}

</mosaic_0001>

<bundles_post_ra>
// kernel: tpu_custom_call.1
= control target key start
LH: loop header
LB: loop body
LE: loop exit
PB: predicated region body
PF: predicated region fallthrough
CT: control target
= control target key end

     0   :  { %s2841_s27 = smov 0   ;;  %s3527_s0 = inlined_call_operand.vmem [shape: f32[256,8], index: 0, kind: input, shape index: {}]   ;;  %s3528_s1 = inlined_call_operand.vmem [shape: f32[8,128], index: 1, kind: input, shape index: {}]   ;;  %s3529_s2 = inlined_call_operand.vmem [shape: f32[1,128], index: 2, kind: input, shape index: {}]   ;;  %s3530_s3 = inlined_call_operand.vmem [shape: f32[128,512], index: 3, kind: input, shape index: {}]   ;;  %s3531_s4 = inlined_call_operand.vmem [shape: f32[512,64], index: 4, kind: input, shape index: {}]   ;;  %s3532_s5 = inlined_call_operand.vmem [shape: f32[1,512], index: 5, kind: input, shape index: {}]   ;;  %s3533_s6 = inlined_call_operand.vmem [shape: f32[1,64], index: 6, kind: input, shape index: {}]   ;;  %s3534_s7 = inlined_call_operand.vmem [shape: f32[64,8], index: 7, kind: input, shape index: {}]   ;;  %s3535_s8 = inlined_call_operand.vmem [shape: f32[256,8], index: 8, kind: output, shape index: {}]  }
   0x1 LB: > { %s2050_s28 = sadd.s32 4294967295, %s2793_s27   ;;  %p2054_p0 = scmp.ge.s32.totalorder %s2793_s27, 1  ;;  %s2793_s27 = sphi %s2841_s27, %s18_s27  }
   0x2   : > { %p263_p1 = scmp.lt.s32.totalorder %s2793_s27, 3 }
   0x4   : > { %p264_p2 = pnand %p2054_p0, %p263_p1 }
   0x5   : > { %s2055_s9 = sshll.u32 (!%p264_p2), %s2050_s28, 4 }
   0x6   : > { %267 = sbr.rel (%p264_p2) target bundleno = 980 (0x3d4), region = 52  ;;  %p298_p3 = scmp.lt.s32.totalorder (!%p264_p2), %s2055_s9, 31 }
   0xb   : > { %v325_v0 = vld [vmem:[%s3528_s1] sm:$0xff]  ;;  %s3537_s9 = smov (!%p298_p3, %s2055_s9), 31  ;;  %vm333_vm0 = vcmask 64512   ;;  %v684_v17 = vld [vmem:[%s3530_s3 + $0x1e8] sm:$0xff]  ;;  %v686_v18 = vld [vmem:[%s3530_s3 + $0x1f8] sm:$0xff]  ;;  %vm1784_vm1 = vcmask 523264  }
   0xc   : > { %2376 = vmatprep.subr.mxu0 %v325_v0  ;;  %s2056_s10 = sshll.u32 %s3537_s9, 3  ;;  %709 = vmatprep.subr.mxu1 %v684_v17  ;;  %v683_v19 = vld [vmem:[%s3530_s3 + $0x1e0] sm:$0xff]  ;;  %v685_v20 = vld [vmem:[%s3530_s3 + $0x1f0] sm:$0xff]  ;;  %v680_v21 = vld [vmem:[%s3530_s3 + $0x1c8] sm:$0xff]  ;;  %v2795_v17 = vmov 0.0  }
   0xd   : > { %2377 = vmatpush3.msra.mxu0 %v325_v0  ;;  %s2860_s13 = scalar_lea.vmem %s3527_s0, %s2056_s10  ;;  %710 = vmatpush1.msra.mxu1 %v683_v19  ;;  %v682_v22 = vld [vmem:[%s3530_s3 + $0x1d8] sm:$0xff]  ;;  %v679_v23 = vld [vmem:[%s3530_s3 + $0x1c0] sm:$0xff]  ;;  %v681_v24 = vld [vmem:[%s3530_s3 + $0x1d0] sm:$0xff]  ;;  %s3490_s29 = scalar_lea.vmem %s3535_s8, %s2056_s10 }
   0xe   : > { %v309_v1 = vld [vmem:[%s2860_s13] sm:$0xff]  ;;  %v310_v2 = vld [vmem:[%s2860_s13 + $0x8] sm:$0xff]  ;;  %v311_v3 = vld [vmem:[%s2860_s13 + $0x10] sm:$0xff]  ;;  %870 = vmatprep.subr.mxu0 %v686_v18  ;;  %711 = vmatprep.subr.mxu1 %v680_v21 }
   0xf   : > { %2378 = vmatprep.mubr.msk.f32.mxu0 %vm333_vm0, %v309_v1  ;;  %v312_v4 = vld [vmem:[%s2860_s13 + $0x18] sm:$0xff]  ;;  %v313_v5 = vld [vmem:[%s2860_s13 + $0x20] sm:$0xff]  ;;  %v314_v6 = vld [vmem:[%s2860_s13 + $0x28] sm:$0xff]  ;;  %712 = vmatpush1.msra.mxu1 %v679_v23 }
  0x10   : > { %2379 = vmatmul.mubr.msk.f32.vlgmr.msra.gmra.mxu0 %vm333_vm0, %v310_v2  ;;  %v315_v7 = vld [vmem:[%s2860_s13 + $0x30] sm:$0xff]  ;;  %v316_v8 = vld [vmem:[%s2860_s13 + $0x38] sm:$0xff]  ;;  %v317_v9 = vld [vmem:[%s2860_s13 + $0x40] sm:$0xff]  ;;  %773 = vmatprep.mubr.f32.mxu1 %v2795_v17 }
  0x11   : > { %2381 = vmatprep.mubr.msk.f32.mxu0 %vm333_vm0, %v311_v3  ;;  %v318_v10 = vld [vmem:[%s2860_s13 + $0x48] sm:$0xff]  ;;  %v319_v11 = vld [vmem:[%s2860_s13 + $0x50] sm:$0xff]  ;;  %v320_v12 = vld [vmem:[%s2860_s13 + $0x58] sm:$0xff]  ;;  %871 = vmatpush1.msra.mxu0 %v685_v20 }
  0x12   : > { %v321_v13 = vld [vmem:[%s2860_s13 + $0x60] sm:$0xff]  ;;  %v322_v14 = vld [vmem:[%s2860_s13 + $0x68] sm:$0xff]  ;;  %v323_v15 = vld [vmem:[%s2860_s13 + $0x70] sm:$0xff]  ;;  %872 = vmatprep.subr.mxu0 %v682_v22 }
  0x13   : > { %v324_v16 = vld [vmem:[%s2860_s13 + $0x78] sm:$0xff]  ;;  %873 = vmatpush1.msra.mxu0 %v681_v24  ;;  %v676_v25 = vld [vmem:[%s3530_s3 + $0x1a8] sm:$0xff]  ;;  %v675_v27 = vld [vmem:[%s3530_s3 + $0x1a0] sm:$0xff] }
  0x14   : > { %2382 = vmatmul.mubr.msk.f32.gmra.mxu0 %vm333_vm0, %v312_v4  ;;  %v678_v26 = vld [vmem:[%s3530_s3 + $0x1b8] sm:$0xff]  ;;  %713 = vmatprep.subr.mxu1 %v676_v25  ;;  %v677_v28 = vld [vmem:[%s3530_s3 + $0x1b0] sm:$0xff]  ;;  %v672_v29 = vld [vmem:[%s3530_s3 + $0x188] sm:$0xff] }
  0x15   : > { %2384 = vmatprep.mubr.msk.f32.mxu0 %vm333_vm0, %v313_v5  ;;  %874 = vmatprep.subr.mxu0 %v678_v26  ;;  %v674_v30 = vld [vmem:[%s3530_s3 + $0x198] sm:$0xff]  ;;  %v671_v31 = vld [vmem:[%s3530_s3 + $0x180] sm:$0xff]  ;;  %v673_v32 = vld [vmem:[%s3530_s3 + $0x190] sm:$0xff] }
  0x16   : > { %714 = vmatpush1.msra.mxu1 %v675_v27  ;;  %875 = vmatpush1.msra.mxu0 %v677_v28  ;;  %v668_v33 = vld [vmem:[%s3530_s3 + $0x168] sm:$0xff]  ;;  %v670_v34 = vld [vmem:[%s3530_s3 + $0x178] sm:$0xff]  ;;  %v667_v35 = vld [vmem:[%s3530_s3 + $0x160] sm:$0xff] }
  0x17   : > { %715 = vmatprep.subr.mxu1 %v672_v29  ;;  %876 = vmatprep.subr.mxu0 %v674_v30  ;;  %v669_v36 = vld [vmem:[%s3530_s3 + $0x170] sm:$0xff]  ;;  %v664_v37 = vld [vmem:[%s3530_s3 + $0x148] sm:$0xff]  ;;  %v666_v38 = vld [vmem:[%s3530_s3 + $0x158] sm:$0xff] }
  0x18   : > { %2385 = vmatmul.mubr.msk.f32.gmra.mxu0 %vm333_vm0, %v314_v6  ;;  %716 = vmatpush1.msra.mxu1 %v671_v31  ;;  %v663_v39 = vld [vmem:[%s3530_s3 + $0x140] sm:$0xff]  ;;  %v665_v40 = vld [vmem:[%s3530_s3 + $0x150] sm:$0xff]  ;;  %v660_v41 = vld [vmem:[%s3530_s3 + $0x128] sm:$0xff] }
  0x19   : > { %2387 = vmatprep.mubr.msk.f32.mxu0 %vm333_vm0, %v315_v7  ;;  %877 = vmatpush1.msra.mxu0 %v673_v32  ;;  %v662_v42 = vld [vmem:[%s3530_s3 + $0x138] sm:$0xff]  ;;  %v659_v43 = vld [vmem:[%s3530_s3 + $0x120] sm:$0xff]  ;;  %v661_v44 = vld [vmem:[%s3530_s3 + $0x130] sm:$0xff] }
  0x1a   : > { %717 = vmatprep.subr.mxu1 %v668_v33  ;;  %878 = vmatprep.subr.mxu0 %v670_v34  ;;  %v656_v45 = vld [vmem:[%s3530_s3 + $0x108] sm:$0xff]  ;;  %v658_v46 = vld [vmem:[%s3530_s3 + $0x118] sm:$0xff]  ;;  %v655_v47 = vld [vmem:[%s3530_s3 + $0x100] sm:$0xff] }
  0x1b   : > { %718 = vmatpush1.msra.mxu1 %v667_v35  ;;  %879 = vmatpush1.msra.mxu0 %v669_v36  ;;  %v657_v48 = vld [vmem:[%s3530_s3 + $0x110] sm:$0xff]  ;;  %v652_v49 = vld [vmem:[%s3530_s3 + $0xe8] sm:$0xff]  ;;  %v654_v50 = vld [vmem:[%s3530_s3 + $0xf8] sm:$0xff] }
  0x1c   : > { %2388 = vmatmul.mubr.msk.f32.gmra.mxu0 %vm333_vm0, %v316_v8  ;;  %719 = vmatprep.subr.mxu1 %v664_v37  ;;  %v651_v51 = vld [vmem:[%s3530_s3 + $0xe0] sm:$0xff]  ;;  %v653_v52 = vld [vmem:[%s3530_s3 + $0xf0] sm:$0xff]  ;;  %v648_v53 = vld [vmem:[%s3530_s3 + $0xc8] sm:$0xff] }
  0x1d   : > { %2390 = vmatprep.mubr.msk.f32.mxu0 %vm333_vm0, %v317_v9  ;;  %880 = vmatprep.subr.mxu0 %v666_v38  ;;  %v650_v54 = vld [vmem:[%s3530_s3 + $0xd8] sm:$0xff]  ;;  %v647_v55 = vld [vmem:[%s3530_s3 + $0xc0] sm:$0xff]  ;;  %v649_v56 = vld [vmem:[%s3530_s3 + $0xd0] sm:$0xff] }
  0x1e   : > { %720 = vmatpush1.msra.mxu1 %v663_v39  ;;  %881 = vmatpush1.msra.mxu0 %v665_v40  ;;  %v644_v57 = vld [vmem:[%s3530_s3 + $0xa8] sm:$0xff]  ;;  %v646_v58 = vld [vmem:[%s3530_s3 + $0xb8] sm:$0xff]  ;;  %v643_v59 = vld [vmem:[%s3530_s3 + $0xa0] sm:$0xff] }
  0x1f   : > { %721 = vmatprep.subr.mxu1 %v660_v41  ;;  %882 = vmatprep.subr.mxu0 %v662_v42  ;;  %v645_v60 = vld [vmem:[%s3530_s3 + $0xb0] sm:$0xff]  ;;  %v640_v61 = vld [vmem:[%s3530_s3 + $0x88] sm:$0xff]  ;;  %v642_v62 = vld [vmem:[%s3530_s3 + $0x98] sm:$0xff] }
  0x20   : > { %2391 = vmatmul.mubr.msk.f32.gmra.mxu0 %vm333_vm0, %v318_v10  ;;  %722 = vmatpush1.msra.mxu1 %v659_v43  ;;  %v639_v63 = vld [vmem:[%s3530_s3 + $0x80] sm:$0xff]  ;;  %v641_v0 = vld [vmem:[%s3530_s3 + $0x90] sm:$0xff]  ;;  %v636_v1 = vld [vmem:[%s3530_s3 + $0x68] sm:$0xff] }
  0x21   : > { %2393 = vmatprep.mubr.msk.f32.mxu0 %vm333_vm0, %v319_v11  ;;  %883 = vmatpush1.msra.mxu0 %v661_v44  ;;  %v638_v2 = vld [vmem:[%s3530_s3 + $0x78] sm:$0xff]  ;;  %v635_v3 = vld [vmem:[%s3530_s3 + $0x60] sm:$0xff]  ;;  %v637_v4 = vld [vmem:[%s3530_s3 + $0x70] sm:$0xff] }
  0x22   : > { %723 = vmatprep.subr.mxu1 %v656_v45  ;;  %884 = vmatprep.subr.mxu0 %v658_v46  ;;  %v632_v5 = vld [vmem:[%s3530_s3 + $0x48] sm:$0xff]  ;;  %v634_v6 = vld [vmem:[%s3530_s3 + $0x58] sm:$0xff]  ;;  %v631_v7 = vld [vmem:[%s3530_s3 + $0x40] sm:$0xff] }
  0x23   : > { %724 = vmatpush1.msra.mxu1 %v655_v47  ;;  %885 = vmatpush1.msra.mxu0 %v657_v48  ;;  %v633_v8 = vld [vmem:[%s3530_s3 + $0x50] sm:$0xff]  ;;  %v628_v9 = vld [vmem:[%s3530_s3 + $0x28] sm:$0xff]  ;;  %v630_v10 = vld [vmem:[%s3530_s3 + $0x38] sm:$0xff] }
  0x24   : > { %2394 = vmatmul.mubr.msk.f32.gmra.mxu0 %vm333_vm0, %v320_v12  ;;  %725 = vmatprep.subr.mxu1 %v652_v49  ;;  %v627_v11 = vld [vmem:[%s3530_s3 + $0x20] sm:$0xff]  ;;  %v629_v12 = vld [vmem:[%s3530_s3 + $0x30] sm:$0xff]  ;;  %v1446_v18 = vld [vmem:[%s3531_s4 + $0xf8] sm:$0xff] }
  0x25   : > { %2396 = vmatprep.mubr.msk.f32.mxu0 %vm333_vm0, %v321_v13  ;;  %886 = vmatprep.subr.mxu0 %v654_v50  ;;  %v624_v13 = vld [vmem:[%s3530_s3 + $0x8] sm:$0xff]  ;;  %v1478_v19 = vld [vmem:[%s3531_s4 + $0x1f8] sm:$0xff]  ;;  %v3097_v20 = vld [vmem:[%s3529_s2] ss:$0 sm:$0xff] }
  0x26   : > { %726 = vmatpush1.msra.mxu1 %v651_v51  ;;  %887 = vmatpush1.msra.mxu0 %v653_v52 }
  0x27   : > { %727 = vmatprep.subr.mxu1 %v648_v53  ;;  %888 = vmatprep.subr.mxu0 %v650_v54 }
  0x28   : > { %2397 = vmatmul.mubr.msk.f32.gmra.mxu0 %vm333_vm0, %v322_v14  ;;  %728 = vmatpush1.msra.mxu1 %v647_v55  ;;  %v626_v14 = vld [vmem:[%s3530_s3 + $0x18] sm:$0xff] }
  0x29   : > { %2399 = vmatprep.mubr.msk.f32.mxu0 %vm333_vm0, %v323_v15  ;;  %889 = vmatpush1.msra.mxu0 %v649_v56  ;;  %v623_v15 = vld [vmem:[%s3530_s3] sm:$0xff] }
  0x2a   : > { %729 = vmatprep.subr.mxu1 %v644_v57  ;;  %890 = vmatprep.subr.mxu0 %v646_v58 }
  0x2b   : > { %730 = vmatpush1.msra.mxu1 %v643_v59  ;;  %891 = vmatpush1.msra.mxu0 %v645_v60 }
  0x2c   : > { %2400 = vmatmul.mubr.msk.f32.gmra.mxu0 %vm333_vm0, %v324_v16  ;;  %731 = vmatprep.subr.mxu1 %v640_v61  ;;  %v625_v16 = vld [vmem:[%s3530_s3 + $0x10] sm:$0xff] }
  0x2d   : > { %892 = vmatprep.subr.mxu0 %v642_v62  ;;  %732 = vmatpush1.msra.mxu1 %v639_v63 }
  0x2e   : > { %893 = vmatpush1.msra.mxu0 %v641_v0  ;;  %733 = vmatprep.subr.mxu1 %v636_v1 }
  0x2f   : > { %894 = vmatprep.subr.mxu0 %v638_v2  ;;  %734 = vmatpush1.msra.mxu1 %v635_v3  ;;  %v1430_v3 = vld [vmem:[%s3531_s4 + $0x78] sm:$0xff] }
  0x30   : > { %895 = vmatpush1.msra.mxu0 %v637_v4  ;;  %735 = vmatprep.subr.mxu1 %v632_v5  ;;  %v1462_v4 = vld [vmem:[%s3531_s4 + $0x178] sm:$0xff]  ;;  %v1445_v5 = vld [vmem:[%s3531_s4 + $0xf0] sm:$0xff] }
  0x31   : > { %896 = vmatprep.subr.mxu0 %v634_v6  ;;  %736 = vmatpush1.msra.mxu1 %v631_v7  ;;  %v1477_v6 = vld [vmem:[%s3531_s4 + $0x1f0] sm:$0xff] }
  0x32   : > { %897 = vmatpush1.msra.mxu0 %v633_v8  ;;  %737 = vmatprep.subr.mxu1 %v628_v9 }
  0x33   : > { %898 = vmatprep.subr.mxu0 %v630_v10  ;;  %738 = vmatpush1.msra.mxu1 %v627_v11 }
  0x34   : > { %899 = vmatpush1.msra.mxu0 %v629_v12  ;;  %739 = vmatprep.subr.mxu1 %v624_v13  ;;  %v1429_v13 = vld [vmem:[%s3531_s4 + $0x70] sm:$0xff] }
  0x35   : > { %900 = vmatprep.subr.mxu0 %v626_v14  ;;  %740 = vmatpush1.msra.mxu1 %v623_v15  ;;  %v1461_v14 = vld [vmem:[%s3531_s4 + $0x170] sm:$0xff]  ;;  %v1444_v15 = vld [vmem:[%s3531_s4 + $0xe8] sm:$0xff] }
  0x36   : > { %901 = vmatpush1.msra.mxu0 %v625_v16  ;;  %934 = vmatprep.mubr.f32.mxu0 %v2795_v17  ;;  %v1476_v16 = vld [vmem:[%s3531_s4 + $0x1e8] sm:$0xff] }
  0x37   : > { %2192 = vmatprep.subr.mxu1 %v1446_v18  ;;  %2272 = vmatprep.subr.mxu0 %v1478_v19 }
  0xd0   : > { %v2380_v21 = vpop.f32.mrf.mxu0 }
  0xd1   : > { %v454_v22 = vadd.f32 %v2380_v21, %v3097_v20 }
  0xd2   : > { %v448_v23 = vpop.f32.mrf.mxu0 }
  0xd3   : > { %v2077_v24 = vmul.f32 -1.442695, %v454_v22  ;;  %v449_v25 = vadd.f32 %v3097_v20, %v448_v23 }
  0xd4   : > { %v2383_v26 = vpop.f32.mrf.mxu0 }
  0xd5   : > { %v2076_v27 = vmul.f32 -1.442695, %v449_v25  ;;  %2467 = vpow2.f32 %v2077_v24  ;;  %v464_v29 = vadd.f32 %v2383_v26, %v3097_v20  ;;  %v1428_v25 = vld [vmem:[%s3531_s4 + $0x68] sm:$0xff] }
  0xd6   : > { %v458_v28 = vpop.f32.mrf.mxu0  ;;  %v1460_v26 = vld [vmem:[%s3531_s4 + $0x168] sm:$0xff] }
  0xd7   : > { %2469 = vpow2.f32 %v2076_v27  ;;  %v459_v30 = vadd.f32 %v3097_v20, %v458_v28  ;;  %v2079_v34 = vmul.f32 -1.442695, %v464_v29  ;;  %v1443_v27 = vld [vmem:[%s3531_s4 + $0xe0] sm:$0xff] }
  0xd8   : > { %v2386_v31 = vpop.f32.mrf.mxu0  ;;  %v1475_v28 = vld [vmem:[%s3531_s4 + $0x1e0] sm:$0xff] }
  0xd9   : > { %v2078_v32 = vmul.f32 -1.442695, %v459_v30  ;;  %v474_v37 = vadd.f32 %v2386_v31, %v3097_v20 }
  0xda   : > { %v468_v33 = vpop.f32.mrf.mxu0 }
  0xdb   : > { %2471 = vpow2.f32 %v2078_v32  ;;  %v469_v35 = vadd.f32 %v3097_v20, %v468_v33  ;;  %v2081_v40 = vmul.f32 -1.442695, %v474_v37  ;;  %v1442_v37 = vld [vmem:[%s3531_s4 + $0xd8] sm:$0xff] }
  0xdc   : > { %v2389_v36 = vpop.f32.mrf.mxu0  ;;  %2473 = vpow2.f32 %v2079_v34 }
  0xdd   : > { %v2080_v38 = vmul.f32 -1.442695, %v469_v35  ;;  %v484_v46 = vadd.f32 %v2389_v36, %v3097_v20  ;;  %v1427_v35 = vld [vmem:[%s3531_s4 + $0x60] sm:$0xff] }
  0xde   : > { %v478_v39 = vpop.f32.mrf.mxu0  ;;  %v1459_v36 = vld [vmem:[%s3531_s4 + $0x160] sm:$0xff] }
  0xdf   : > { %v479_v41 = vadd.f32 %v3097_v20, %v478_v39  ;;  %2475 = vpow2.f32 %v2080_v38  ;;  %v2083_v51 = vmul.f32 -1.442695, %v484_v46  ;;  %v1474_v38 = vld [vmem:[%s3531_s4 + $0x1d8] sm:$0xff]  ;;  %v1441_v46 = vld [vmem:[%s3531_s4 + $0xd0] sm:$0xff] }
  0xe0   : > { %v2392_v43 = vpop.f32.mrf.mxu0  ;;  %2477 = vpow2.f32 %v2081_v40 }
  0xe1   : > { %v2082_v47 = vmul.f32 -1.442695, %v479_v41  ;;  %v494_v56 = vadd.f32 %v2392_v43, %v3097_v20 }
  0xe2   : > { %v2468_v42 = vpop.eup %2467  ;;  %v488_v49 = vpop.f32.mrf.mxu0 }
  0xe3   : > { %v576_v48 = vadd.f32 1.0, %v2468_v42  ;;  %v489_v52 = vadd.f32 %v3097_v20, %v488_v49  ;;  %v2085_v61 = vmul.f32 -1.442695, %v494_v56 }
  0xe4   : > { %v2470_v44 = vpop.eup %2469  ;;  %v2395_v54 = vpop.f32.mrf.mxu0 }
  0xe5   : > { %v575_v45 = vadd.f32 1.0, %v2470_v44  ;;  %v2084_v57 = vmul.f32 -1.442695, %v489_v52  ;;  %v504_v7 = vadd.f32 %v2395_v54, %v3097_v20  ;;  %v1426_v44 = vld [vmem:[%s3531_s4 + $0x58] sm:$0xff]  ;;  %v1440_v54 = vld [vmem:[%s3531_s4 + $0xc8] sm:$0xff] }
  0xe6   : > { %v498_v59 = vpop.f32.mrf.mxu0 }
  0xe7   : > { %2479 = vrcp.f32 %v575_v45  ;;  %v499_v62 = vadd.f32 %v3097_v20, %v498_v59  ;;  %v2087_v18 = vmul.f32 -1.442695, %v504_v7  ;;  %v1458_v45 = vld [vmem:[%s3531_s4 + $0x158] sm:$0xff] }
  0xe8   : > { %v2472_v50 = vpop.eup %2471  ;;  %2481 = vpow2.f32 %v2082_v47  ;;  %v2398_v1 = vpop.f32.mrf.mxu0  ;;  %v1473_v47 = vld [vmem:[%s3531_s4 + $0x1d0] sm:$0xff] }
  0xe9   : > { %2483 = vrcp.f32 %v576_v48  ;;  %v577_v53 = vadd.f32 1.0, %v2472_v50  ;;  %v2474_v55 = vpop.eup %2473  ;;  %v2086_v8 = vmul.f32 -1.442695, %v499_v62  ;;  %v514_v29 = vadd.f32 %v2398_v1, %v3097_v20 }
  0xea   : > { %2485 = vpow2.f32 %v2083_v51  ;;  %v578_v58 = vadd.f32 1.0, %v2474_v55  ;;  %v508_v11 = vpop.f32.mrf.mxu0  ;;  %v1472_v55 = vld [vmem:[%s3531_s4 + $0x1c8] sm:$0xff] }
  0xeb   : > { %2487 = vrcp.f32 %v577_v53  ;;  %v509_v19 = vadd.f32 %v3097_v20, %v508_v11  ;;  %v2089_v39 = vmul.f32 -1.442695, %v514_v29  ;;  %v1425_v53 = vld [vmem:[%s3531_s4 + $0x50] sm:$0xff]  ;;  %v1436_v29 = vld [vmem:[%s3531_s4 + $0xa8] sm:$0xff] }
  0xec   : > { %v2476_v60 = vpop.eup %2475  ;;  %2489 = vpow2.f32 %v2084_v57  ;;  %v2401_v23 = vpop.f32.mrf.mxu0 }
  0xed   : > { %v2478_v63 = vpop.eup %2477  ;;  %2491 = vrcp.f32 %v578_v58  ;;  %v579_v0 = vadd.f32 1.0, %v2476_v60  ;;  %v2088_v30 = vmul.f32 -1.442695, %v509_v19  ;;  %v524_v48 = vadd.f32 %v2401_v23, %v3097_v20  ;;  %v1424_v60 = vld [vmem:[%s3531_s4 + $0x48] sm:$0xff]  ;;  %v1455_v19 = vld [vmem:[%s3531_s4 + $0x140] sm:$0xff]  ;;  %v1422_v23 = vld [vmem:[%s3531_s4 + $0x38] sm:$0xff] }
  0xee   : > { %2493 = vpow2.f32 %v2085_v61  ;;  %v580_v10 = vadd.f32 1.0, %v2478_v63  ;;  %v518_v33 = vpop.f32.mrf.mxu0 }
  0xef   : > { %2495 = vrcp.f32 %v579_v0  ;;  %v519_v40 = vadd.f32 %v3097_v20, %v518_v33  ;;  %v1457_v20 = vld [vmem:[%s3531_s4 + $0x150] sm:$0xff]  ;;  %v2091_v56 = vmul.f32 -1.442695, %v524_v48  ;;  %v1435_v33 = vld [vmem:[%s3531_s4 + $0xa0] sm:$0xff]  ;;  %v1448_v48 = vld [vmem:[%s3531_s4 + $0x108] sm:$0xff] }
  0xf0   : > { %2497 = vpow2.f32 %v2086_v8 }
  0xf1   : > { %2499 = vrcp.f32 %v580_v10  ;;  %v2090_v49 = vmul.f32 -1.442695, %v519_v40  ;;  %v1450_v40 = vld [vmem:[%s3531_s4 + $0x118] sm:$0xff] }
  0xf2   : > { %2501 = vpow2.f32 %v2087_v18  ;;  %v1471_v18 = vld [vmem:[%s3531_s4 + $0x1c0] sm:$0xff] }
  0xf4   : > { %v2480_v2 = vpop.eup %2479 }
  0xf5   : > { %774 = vmatmul.mubr.f32.vlgmr.msra.gmra.mxu1 %v2480_v2  ;;  %935 = vmatmul.mubr.f32.vlgmr.msra.gmra.mxu0 %v2480_v2  ;;  %v2482_v9 = vpop.eup %2481 }
  0xf6   : > { %779 = vmatprep.mubr.f32.mxu1 %v2795_v17  ;;  %940 = vmatprep.mubr.f32.mxu0 %v2795_v17  ;;  %v2484_v12 = vpop.eup %2483  ;;  %v581_v22 = vadd.f32 1.0, %v2482_v9 }
  0xf7   : > { %2193 = vmatpush3.msra.mxu1 %v1430_v3  ;;  %2273 = vmatpush3.msra.mxu0 %v1462_v4  ;;  %v2486_v21 = vpop.eup %2485 }
  0xf8   : > { %2194 = vmatprep.subr.mxu1 %v1445_v5  ;;  %2274 = vmatprep.subr.mxu0 %v1477_v6  ;;  %v2488_v24 = vpop.eup %2487  ;;  %v582_v32 = vadd.f32 1.0, %v2486_v21  ;;  %2503 = vrcp.f32 %v581_v22  ;;  %v1438_v21 = vld [vmem:[%s3531_s4 + $0xb8] sm:$0xff] }
  0xf9   : > { %780 = vmatmul.mubr.f32.gmra.mxu1 %v2484_v12  ;;  %941 = vmatmul.mubr.f32.gmra.mxu0 %v2484_v12  ;;  %v2490_v31 = vpop.eup %2489  ;;  %2505 = vpow2.f32 %v2088_v30  ;;  %v1470_v22 = vld [vmem:[%s3531_s4 + $0x1b8] sm:$0xff]  ;;  %v1468_v30 = vld [vmem:[%s3531_s4 + $0x1a8] sm:$0xff] }
  0xfa   : > { %785 = vmatprep.mubr.f32.mxu1 %v2795_v17  ;;  %946 = vmatprep.mubr.f32.mxu0 %v2795_v17  ;;  %v2492_v34 = vpop.eup %2491  ;;  %2507 = vrcp.f32 %v582_v32  ;;  %v583_v42 = vadd.f32 1.0, %v2490_v31  ;;  %v1420_v31 = vld [vmem:[%s3531_s4 + $0x28] sm:$0xff] }
  0xfb   : > { %2195 = vmatpush3.msra.mxu1 %v1429_v13  ;;  %2275 = vmatpush3.msra.mxu0 %v1461_v14  ;;  %v2494_v41 = vpop.eup %2493  ;;  %2509 = vpow2.f32 %v2089_v39  ;;  %v1452_v32 = vld [vmem:[%s3531_s4 + $0x128] sm:$0xff]  ;;  %v1418_v39 = vld [vmem:[%s3531_s4 + $0x18] sm:$0xff] }
  0xfc   : > { %2196 = vmatprep.subr.mxu1 %v1444_v15  ;;  %2276 = vmatprep.subr.mxu0 %v1476_v16  ;;  %v2496_v43 = vpop.eup %2495  ;;  %v584_v51 = vadd.f32 1.0, %v2494_v41  ;;  %2511 = vrcp.f32 %v583_v42  ;;  %v1456_v15 = vld [vmem:[%s3531_s4 + $0x148] sm:$0xff]  ;;  %v1439_v16 = vld [vmem:[%s3531_s4 + $0xc0] sm:$0xff]  ;;  %v1433_v41 = vld [vmem:[%s3531_s4 + $0x90] sm:$0xff] }
  0xfd   : > { %786 = vmatmul.mubr.f32.gmra.mxu1 %v2488_v24  ;;  %947 = vmatmul.mubr.f32.gmra.mxu0 %v2488_v24  ;;  %v2498_v50 = vpop.eup %2497  ;;  %2513 = vpow2.f32 %v2090_v49  ;;  %v1454_v24 = vld [vmem:[%s3531_s4 + $0x138] sm:$0xff]  ;;  %v1465_v42 = vld [vmem:[%s3531_s4 + $0x190] sm:$0xff]  ;;  %v1431_v49 = vld [vmem:[%s3531_s4 + $0x80] sm:$0xff] }
  0xfe   : > { %791 = vmatprep.mubr.f32.mxu1 %v2795_v17  ;;  %952 = vmatprep.mubr.f32.mxu0 %v2795_v17  ;;  %v2500_v52 = vpop.eup %2499  ;;  %2515 = vrcp.f32 %v584_v51  ;;  %v585_v58 = vadd.f32 1.0, %v2498_v50  ;;  %v1463_v50 = vld [vmem:[%s3531_s4 + $0x180] sm:$0xff] }
  0xff   : > { %2197 = vmatpush3.msra.mxu1 %v1428_v25  ;;  %2277 = vmatpush3.msra.mxu0 %v1460_v26  ;;  %v2502_v57 = vpop.eup %2501  ;;  %2517 = vpow2.f32 %v2091_v56  ;;  %v1437_v25 = vld [vmem:[%s3531_s4 + $0xb0] sm:$0xff]  ;;  %v1415_v51 = vld [vmem:[%s3531_s4] sm:$0xff] }
 0x100   : > { %2198 = vmatprep.subr.mxu1 %v1443_v27  ;;  %2278 = vmatprep.subr.mxu0 %v1475_v28  ;;  %v586_v62 = vadd.f32 1.0, %v2502_v57  ;;  %2519 = vrcp.f32 %v585_v58  ;;  %v1469_v26 = vld [vmem:[%s3531_s4 + $0x1b0] sm:$0xff]  ;;  %v687_v56 = vld [vmem:[%s3532_s5] sm:$0xf] }
 0x101   : > { %792 = vmatmul.mubr.f32.gmra.mxu1 %v2492_v34  ;;  %953 = vmatmul.mubr.f32.gmra.mxu0 %v2492_v34  ;;  %v1421_v27 = vld [vmem:[%s3531_s4 + $0x30] sm:$0xff]  ;;  %v1467_v34 = vld [vmem:[%s3531_s4 + $0x1a0] sm:$0xff] }
 0x102   : > { %797 = vmatprep.mubr.f32.mxu1 %v2795_v17  ;;  %958 = vmatprep.mubr.f32.mxu0 %v2795_v17  ;;  %2521 = vrcp.f32 %v586_v62  ;;  %v1453_v28 = vld [vmem:[%s3531_s4 + $0x130] sm:$0xff] }
 0x103   : > { %2199 = vmatpush3.msra.mxu1 %v1427_v35  ;;  %2279 = vmatpush3.msra.mxu0 %v1459_v36  ;;  %v1419_v35 = vld [vmem:[%s3531_s4 + $0x20] sm:$0xff] }
 0x104   : > { %2200 = vmatprep.subr.mxu1 %v1442_v37  ;;  %2280 = vmatprep.subr.mxu0 %v1474_v38  ;;  %v1451_v36 = vld [vmem:[%s3531_s4 + $0x120] sm:$0xff]  ;;  %v1434_v37 = vld [vmem:[%s3531_s4 + $0x98] sm:$0xff] }
 0x105   : > { %798 = vmatmul.mubr.f32.gmra.mxu1 %v2496_v43  ;;  %959 = vmatmul.mubr.f32.gmra.mxu0 %v2496_v43  ;;  %v2504_v59 = vpop.eup %2503  ;;  %v1466_v38 = vld [vmem:[%s3531_s4 + $0x198] sm:$0xff]  ;;  %v1417_v43 = vld [vmem:[%s3531_s4 + $0x10] sm:$0xff] }
 0x106   : > { %803 = vmatprep.mubr.f32.mxu1 %v2795_v17  ;;  %964 = vmatprep.mubr.f32.mxu0 %v2795_v17  ;;  %v2506_v61 = vpop.eup %2505 }
 0x107   : > { %2201 = vmatpush3.msra.mxu1 %v1426_v44  ;;  %2281 = vmatpush3.msra.mxu0 %v1458_v45  ;;  %v2508_v63 = vpop.eup %2507  ;;  %v587_v1 = vadd.f32 1.0, %v2506_v61  ;;  %v1449_v44 = vld [vmem:[%s3531_s4 + $0x110] sm:$0xff]  ;;  %v1432_v45 = vld [vmem:[%s3531_s4 + $0x88] sm:$0xff] }
 0x108   : > { %2202 = vmatprep.subr.mxu1 %v1441_v46  ;;  %2282 = vmatprep.subr.mxu0 %v1473_v47  ;;  %v2510_v0 = vpop.eup %2509  ;;  %v1464_v46 = vld [vmem:[%s3531_s4 + $0x188] sm:$0xff] }
 0x109   : > { %804 = vmatmul.mubr.f32.gmra.mxu1 %v2500_v52  ;;  %965 = vmatmul.mubr.f32.gmra.mxu0 %v2500_v52  ;;  %v2512_v2 = vpop.eup %2511  ;;  %v588_v4 = vadd.f32 1.0, %v2510_v0  ;;  %2523 = vrcp.f32 %v587_v1  ;;  %v1416_v47 = vld [vmem:[%s3531_s4 + $0x8] sm:$0xff]  ;;  %v1447_v52 = vld [vmem:[%s3531_s4 + $0x100] sm:$0xff] }
 0x10a   : > { %809 = vmatprep.mubr.f32.mxu1 %v2795_v17  ;;  %970 = vmatprep.mubr.f32.mxu0 %v2795_v17  ;;  %v2514_v3 = vpop.eup %2513 }
 0x10b   : > { %2203 = vmatpush3.msra.mxu1 %v1425_v53  ;;  %2283 = vmatpush3.msra.mxu0 %v1457_v20  ;;  %v2516_v5 = vpop.eup %2515  ;;  %2525 = vrcp.f32 %v588_v4  ;;  %v589_v7 = vadd.f32 1.0, %v2514_v3  ;;  %v689_v53 = vlaneseq }
 0x10c   : > { %2204 = vmatprep.subr.mxu1 %v1440_v54  ;;  %2284 = vmatprep.subr.mxu0 %v1472_v55  ;;  %v2518_v6 = vpop.eup %2517 }
 0x10d   : > { %810 = vmatmul.mubr.f32.gmra.mxu1 %v2504_v59  ;;  %971 = vmatmul.mubr.f32.gmra.mxu0 %v2504_v59  ;;  %v2520_v8 = vpop.eup %2519  ;;  %v590_v9 = vadd.f32 1.0, %v2518_v6  ;;  %2527 = vrcp.f32 %v589_v7  ;;  %v690_v20 = vshrl.u32 %v689_v53, 7 }
 0x10e   : > { %815 = vmatprep.mubr.f32.mxu1 %v2795_v17  ;;  %976 = vmatprep.mubr.f32.mxu0 %v2795_v17 }
 0x10f   : > { %2205 = vmatpush3.msra.mxu1 %v1424_v60  ;;  %v2522_v10 = vpop.eup %2521  ;;  %2529 = vrcp.f32 %v590_v9  ;;  %2285 = vmatpush3.msra.mxu0 %v1456_v15  ;;  %v691_v54 = vsub.s32 0, %v690_v20  ;;  %v699_v55 = vsub.s32 2, %v690_v20  ;;  %v695_v57 = vsub.s32 1, %v690_v20 }
 0x110   : > { %2206 = vmatprep.subr.mxu1 %v1439_v16  ;;  %2286 = vmatprep.subr.mxu0 %v1471_v18  ;;  %v703_v58 = vsub.s32 3, %v690_v20 }
 0x111   : > { %816 = vmatmul.mubr.f32.gmra.mxu1 %v2508_v63  ;;  %977 = vmatmul.mubr.f32.gmra.mxu0 %v2508_v63  ;;  %v3334_v59 = vrot.slane %v687_v56, %v691_v54  ;;  %v3336_v60 = vrot.slane %v687_v56, %v699_v55  ;;  %v3338_v61 = vrot.slane %v687_v56, %v695_v57  ;;  %v3361_v54 = vld [vmem:[%s3534_s7 + $0x38] sm:$0xff] }
 0x112   : > { %821 = vmatprep.mubr.f32.mxu1 %v2795_v17  ;;  %982 = vmatprep.mubr.f32.mxu0 %v2795_v17  ;;  %v3340_v62 = vrot.slane %v687_v56, %v703_v58 }
 0x113   : > { %2287 = vmatpush3.msra.mxu0 %v1455_v19 }
 0x114   : > { %2288 = vmatprep.subr.mxu0 %v1470_v22 }
 0x115   : > { %822 = vmatmul.mubr.f32.gmra.mxu1 %v2512_v2  ;;  %983 = vmatmul.mubr.f32.gmra.mxu0 %v2512_v2 }
 0x116   : > { %827 = vmatprep.mubr.f32.mxu1 %v2795_v17  ;;  %988 = vmatprep.mubr.f32.mxu0 %v2795_v17  ;;  %v2524_v11 = vpop.eup %2523 }
 0x117   : > { %2289 = vmatpush3.msra.mxu0 %v1454_v24 }
 0x118   : > { %v2526_v12 = vpop.eup %2525  ;;  %2290 = vmatprep.subr.mxu0 %v1469_v26 }
 0x119   : > { %828 = vmatmul.mubr.f32.gmra.mxu1 %v2516_v5  ;;  %989 = vmatmul.mubr.f32.gmra.mxu0 %v2516_v5 }
 0x11a   : > { %833 = vmatprep.mubr.f32.mxu1 %v2795_v17  ;;  %994 = vmatprep.mubr.f32.mxu0 %v2795_v17  ;;  %v2528_v13 = vpop.eup %2527 }
 0x11b   : > { %2291 = vmatpush3.msra.mxu0 %v1453_v28 }
 0x11c   : > { %v2530_v14 = vpop.eup %2529  ;;  %2292 = vmatprep.subr.mxu0 %v1468_v30 }
 0x11d   : > { %834 = vmatmul.mubr.f32.gmra.mxu1 %v2520_v8  ;;  %995 = vmatmul.mubr.f32.gmra.mxu0 %v2520_v8 }
 0x11e   : > { %839 = vmatprep.mubr.f32.mxu1 %v2795_v17  ;;  %1000 = vmatprep.mubr.f32.mxu0 %v2795_v17 }
 0x11f   : > { %2293 = vmatpush3.msra.mxu0 %v1452_v32 }
 0x120   : > { %2294 = vmatprep.subr.mxu0 %v1467_v34 }
 0x121   : > { %840 = vmatmul.mubr.f32.gmra.mxu1 %v2522_v10  ;;  %1001 = vmatmul.mubr.f32.gmra.mxu0 %v2522_v10 }
 0x122   : > { %845 = vmatprep.mubr.f32.mxu1 %v2795_v17  ;;  %1006 = vmatprep.mubr.f32.mxu0 %v2795_v17 }
 0x123   : > { %2295 = vmatpush3.msra.mxu0 %v1451_v36 }
 0x124   : > { %2296 = vmatprep.subr.mxu0 %v1466_v38 }
 0x125   : > { %846 = vmatmul.mubr.f32.gmra.mxu1 %v2524_v11  ;;  %1007 = vmatmul.mubr.f32.gmra.mxu0 %v2524_v11 }
 0x126   : > { %851 = vmatprep.mubr.f32.mxu1 %v2795_v17  ;;  %1012 = vmatprep.mubr.f32.mxu0 %v2795_v17 }
 0x127   : > { %2297 = vmatpush3.msra.mxu0 %v1450_v40 }
 0x128   : > { %2298 = vmatprep.subr.mxu0 %v1465_v42 }
 0x129   : > { %852 = vmatmul.mubr.f32.gmra.mxu1 %v2526_v12  ;;  %1013 = vmatmul.mubr.f32.gmra.mxu0 %v2526_v12 }
 0x12a   : > { %857 = vmatprep.mubr.f32.mxu1 %v2795_v17  ;;  %1018 = vmatprep.mubr.f32.mxu0 %v2795_v17 }
 0x12b   : > { %2299 = vmatpush3.msra.mxu0 %v1449_v44 }
 0x12c   : > { %2300 = vmatprep.subr.mxu0 %v1464_v46 }
 0x12d   : > { %858 = vmatmul.mubr.f32.gmra.mxu1 %v2528_v13  ;;  %1019 = vmatmul.mubr.f32.gmra.mxu0 %v2528_v13 }
 0x12e   : > { %863 = vmatprep.mubr.f32.mxu1 %v2795_v17  ;;  %1024 = vmatprep.mubr.f32.mxu0 %v2795_v17  ;;  %v1423_v17 = vld [vmem:[%s3531_s4 + $0x40] sm:$0xff] }
 0x12f   : > { %2207 = vmatpush3.msra.mxu1 %v1423_v17  ;;  %2301 = vmatpush3.msra.mxu0 %v1448_v48 }
 0x130   : > { %2208 = vmatprep.subr.mxu1 %v1438_v21  ;;  %2302 = vmatprep.subr.mxu0 %v1463_v50 }
 0x131   : > { %864 = vmatmul.mubr.f32.gmra.mxu1 %v2530_v14  ;;  %1025 = vmatmul.mubr.f32.gmra.mxu0 %v2530_v14 }
 0x132   : > { %2209 = vmatpush3.msra.mxu1 %v1422_v23  ;;  %2303 = vmatpush3.msra.mxu0 %v1447_v52 }
 0x133   : > { %2210 = vmatprep.subr.mxu1 %v1437_v25  ;;  %2402 = vmatprep.subr.mxu0 %v3361_v54 }
 0x134   : > { %2211 = vmatpush3.msra.mxu1 %v1421_v27 }
 0x135   : > { %2212 = vmatprep.subr.mxu1 %v1436_v29 }
 0x136   : > { %2213 = vmatpush3.msra.mxu1 %v1420_v31 }
 0x137   : > { %2214 = vmatprep.subr.mxu1 %v1435_v33 }
 0x138   : > { %2215 = vmatpush3.msra.mxu1 %v1419_v35 }
 0x139   : > { %2216 = vmatprep.subr.mxu1 %v1434_v37 }
 0x13a   : > { %2217 = vmatpush3.msra.mxu1 %v1418_v39 }
 0x13b   : > { %2218 = vmatprep.subr.mxu1 %v1433_v41 }
 0x13c   : > { %2219 = vmatpush3.msra.mxu1 %v1417_v43 }
 0x13d   : > { %2220 = vmatprep.subr.mxu1 %v1432_v45 }
 0x13e   : > { %2221 = vmatpush3.msra.mxu1 %v1416_v47 }
 0x13f   : > { %2222 = vmatprep.subr.mxu1 %v1431_v49 }
 0x140   : > { %2223 = vmatpush3.msra.mxu1 %v1415_v51 }
 0x141   : > { %2442 = vmatprep.subr.mxu1 %v3361_v54 }
 0x1b5   : > { %v775_v63 = vpop.f32.mrf.mxu1  ;;  %v936_v0 = vpop.f32.mrf.mxu0 }
 0x1b6   : > { %v776_v1 = vadd.f32 %v775_v63, %v3334_v59  ;;  %v937_v2 = vadd.f32 %v936_v0, %v3336_v60 }
 0x1b7   : > { %v777_v3 = vpop.f32.mrf.mxu1  ;;  %v938_v4 = vpop.f32.mrf.mxu0 }
 0x1b8   : > { %v2092_v5 = vmul.f32 -1.442695, %v776_v1  ;;  %v2094_v6 = vmul.f32 -1.442695, %v937_v2  ;;  %v778_v7 = vadd.f32 %v777_v3, %v3338_v61  ;;  %v939_v8 = vadd.f32 %v938_v4, %v3340_v62 }
 0x1b9   : > { %v781_v9 = vpop.f32.mrf.mxu1  ;;  %v942_v10 = vpop.f32.mrf.mxu0 }
 0x1ba   : > { %2531 = vpow2.f32 %v2092_v5  ;;  %v2093_v11 = vmul.f32 -1.442695, %v778_v7  ;;  %v2095_v12 = vmul.f32 -1.442695, %v939_v8  ;;  %v782_v13 = vadd.f32 %v781_v9, %v3334_v59 }
 0x1bb   : > { %2533 = vpow2.f32 %v2094_v6  ;;  %v943_v14 = vadd.f32 %v942_v10, %v3336_v60  ;;  %v783_v15 = vpop.f32.mrf.mxu1  ;;  %v944_v16 = vpop.f32.mrf.mxu0 }
 0x1bc   : > { %2535 = vpow2.f32 %v2093_v11  ;;  %v2096_v18 = vmul.f32 -1.442695, %v782_v13  ;;  %v784_v17 = vadd.f32 %v783_v15, %v3338_v61  ;;  %v945_v19 = vadd.f32 %v944_v16, %v3340_v62 }
 0x1bd   : > { %2537 = vpow2.f32 %v2095_v12  ;;  %v2098_v21 = vmul.f32 -1.442695, %v943_v14  ;;  %v787_v22 = vpop.f32.mrf.mxu1  ;;  %v948_v23 = vpop.f32.mrf.mxu0 }
 0x1be   : > { %2539 = vpow2.f32 %v2096_v18  ;;  %v2097_v24 = vmul.f32 -1.442695, %v784_v17  ;;  %v2099_v25 = vmul.f32 -1.442695, %v945_v19  ;;  %v788_v26 = vadd.f32 %v787_v22, %v3334_v59 }
 0x1bf   : > { %2541 = vpow2.f32 %v2098_v21  ;;  %v949_v27 = vadd.f32 %v948_v23, %v3336_v60  ;;  %v789_v28 = vpop.f32.mrf.mxu1  ;;  %v950_v29 = vpop.f32.mrf.mxu0 }
 0x1c0   : > { %2543 = vpow2.f32 %v2097_v24  ;;  %v2100_v30 = vmul.f32 -1.442695, %v788_v26  ;;  %v790_v31 = vadd.f32 %v789_v28, %v3338_v61  ;;  %v951_v32 = vadd.f32 %v950_v29, %v3340_v62 }
 0x1c1   : > { %2545 = vpow2.f32 %v2099_v25  ;;  %v2102_v33 = vmul.f32 -1.442695, %v949_v27  ;;  %v793_v34 = vpop.f32.mrf.mxu1  ;;  %v954_v35 = vpop.f32.mrf.mxu0 }
 0x1c2   : > { %2547 = vpow2.f32 %v2100_v30  ;;  %v2101_v36 = vmul.f32 -1.442695, %v790_v31  ;;  %v2103_v37 = vmul.f32 -1.442695, %v951_v32  ;;  %v794_v38 = vadd.f32 %v793_v34, %v3334_v59 }
 0x1c3   : > { %2549 = vpow2.f32 %v2102_v33  ;;  %v955_v39 = vadd.f32 %v954_v35, %v3336_v60  ;;  %v795_v40 = vpop.f32.mrf.mxu1  ;;  %v956_v41 = vpop.f32.mrf.mxu0 }
 0x1c4   : > { %2551 = vpow2.f32 %v2101_v36  ;;  %v2104_v42 = vmul.f32 -1.442695, %v794_v38  ;;  %v796_v43 = vadd.f32 %v795_v40, %v3338_v61  ;;  %v957_v44 = vadd.f32 %v956_v41, %v3340_v62 }
 0x1c5   : > { %2553 = vpow2.f32 %v2103_v37  ;;  %v2106_v45 = vmul.f32 -1.442695, %v955_v39  ;;  %v799_v46 = vpop.f32.mrf.mxu1  ;;  %v960_v47 = vpop.f32.mrf.mxu0 }
 0x1c6   : > { %2555 = vpow2.f32 %v2104_v42  ;;  %v2105_v48 = vmul.f32 -1.442695, %v796_v43  ;;  %v2107_v49 = vmul.f32 -1.442695, %v957_v44  ;;  %v800_v21 = vadd.f32 %v799_v46, %v3334_v59 }
 0x1c7   : > { %v2532_v50 = vpop.eup %2531  ;;  %2557 = vpow2.f32 %v2106_v45  ;;  %v801_v51 = vpop.f32.mrf.mxu1  ;;  %v961_v25 = vadd.f32 %v960_v47, %v3336_v60 }
 0x1c8   : > { %v962_v52 = vpop.f32.mrf.mxu0  ;;  %v2534_v53 = vpop.eup %2533  ;;  %v1223_v20 = vadd.f32 1.0, %v2532_v50  ;;  %2559 = vpow2.f32 %v2105_v48  ;;  %v802_v28 = vadd.f32 %v801_v51, %v3338_v61  ;;  %v2108_v35 = vmul.f32 -1.442695, %v800_v21 }
 0x1c9   : > { %v2536_v55 = vpop.eup %2535  ;;  %v1225_v56 = vadd.f32 1.0, %v2534_v53  ;;  %2561 = vpow2.f32 %v2107_v49  ;;  %v805_v57 = vpop.f32.mrf.mxu1  ;;  %v963_v31 = vadd.f32 %v962_v52, %v3340_v62  ;;  %v2110_v40 = vmul.f32 -1.442695, %v961_v25 }
 0x1ca   : > { %v2538_v58 = vpop.eup %2537  ;;  %2563 = vrcp.f32 %v1223_v20  ;;  %v1224_v63 = vadd.f32 1.0, %v2536_v55  ;;  %v966_v0 = vpop.f32.mrf.mxu0  ;;  %v806_v36 = vadd.f32 %v805_v57, %v3334_v59  ;;  %v2109_v43 = vmul.f32 -1.442695, %v802_v28 }
 0x1cb   : > { %v2540_v1 = vpop.eup %2539  ;;  %2565 = vrcp.f32 %v1225_v56  ;;  %v1226_v2 = vadd.f32 1.0, %v2538_v58  ;;  %v807_v7 = vpop.f32.mrf.mxu1  ;;  %v967_v41 = vadd.f32 %v966_v0, %v3336_v60  ;;  %v2111_v46 = vmul.f32 -1.442695, %v963_v31 }
 0x1cc   : > { %v2542_v3 = vpop.eup %2541  ;;  %2567 = vrcp.f32 %v1224_v63  ;;  %v1227_v4 = vadd.f32 1.0, %v2540_v1  ;;  %v968_v10 = vpop.f32.mrf.mxu0  ;;  %v808_v44 = vadd.f32 %v807_v7, %v3338_v61  ;;  %v2112_v50 = vmul.f32 -1.442695, %v806_v36  ;;  %v1782_v63 = vld [vmem:[%s3534_s7 + $0x30] sm:$0xff] }
 0x1cd   : > { %v2544_v5 = vpop.eup %2543  ;;  %2569 = vrcp.f32 %v1226_v2  ;;  %v1229_v6 = vadd.f32 1.0, %v2542_v3  ;;  %v811_v18 = vpop.f32.mrf.mxu1  ;;  %v969_v47 = vadd.f32 %v968_v10, %v3340_v62  ;;  %v2114_v20 = vmul.f32 -1.442695, %v967_v41 }
 0x1ce   : > { %v2546_v8 = vpop.eup %2545  ;;  %2571 = vrcp.f32 %v1227_v4  ;;  %v1228_v9 = vadd.f32 1.0, %v2544_v5  ;;  %v972_v22 = vpop.f32.mrf.mxu0  ;;  %v812_v51 = vadd.f32 %v811_v18, %v3334_v59  ;;  %v2113_v57 = vmul.f32 -1.442695, %v808_v44 }
 0x1cf   : > { %v2548_v11 = vpop.eup %2547  ;;  %2573 = vrcp.f32 %v1229_v6  ;;  %v1230_v12 = vadd.f32 1.0, %v2546_v8  ;;  %v813_v32 = vpop.f32.mrf.mxu1  ;;  %v973_v55 = vadd.f32 %v972_v22, %v3336_v60  ;;  %v2115_v1 = vmul.f32 -1.442695, %v969_v47 }
 0x1d0   : > { %v2550_v13 = vpop.eup %2549  ;;  %2575 = vrcp.f32 %v1228_v9  ;;  %v1231_v14 = vadd.f32 1.0, %v2548_v11  ;;  %v974_v37 = vpop.f32.mrf.mxu0  ;;  %v814_v58 = vadd.f32 %v813_v32, %v3338_v61  ;;  %v2116_v5 = vmul.f32 -1.442695, %v812_v51 }
 0x1d1   : > { %v2552_v15 = vpop.eup %2551  ;;  %2577 = vrcp.f32 %v1230_v12  ;;  %v1233_v16 = vadd.f32 1.0, %v2550_v13  ;;  %v817_v48 = vpop.f32.mrf.mxu1  ;;  %v975_v2 = vadd.f32 %v974_v37, %v3340_v62  ;;  %v2118_v9 = vmul.f32 -1.442695, %v973_v55 }
 0x1d2   : > { %v2554_v17 = vpop.eup %2553  ;;  %2579 = vrcp.f32 %v1231_v14  ;;  %v1232_v19 = vadd.f32 1.0, %v2552_v15  ;;  %v978_v52 = vpop.f32.mrf.mxu0  ;;  %v818_v6 = vadd.f32 %v817_v48, %v3334_v59  ;;  %v2117_v12 = vmul.f32 -1.442695, %v814_v58 }
 0x1d3   : > { %v2556_v23 = vpop.eup %2555  ;;  %2581 = vrcp.f32 %v1233_v16  ;;  %v1234_v24 = vadd.f32 1.0, %v2554_v17  ;;  %v819_v3 = vpop.f32.mrf.mxu1  ;;  %v979_v10 = vadd.f32 %v978_v52, %v3336_v60  ;;  %v2119_v14 = vmul.f32 -1.442695, %v975_v2 }
 0x1d4   : > { %v2558_v26 = vpop.eup %2557  ;;  %2583 = vrcp.f32 %v1232_v19  ;;  %v1235_v27 = vadd.f32 1.0, %v2556_v23  ;;  %v980_v7 = vpop.f32.mrf.mxu0  ;;  %v2120_v17 = vmul.f32 -1.442695, %v818_v6 }
 0x1d5   : > { %v2560_v29 = vpop.eup %2559  ;;  %2585 = vrcp.f32 %v1234_v24  ;;  %v1237_v30 = vadd.f32 1.0, %v2558_v26  ;;  %v981_v15 = vadd.f32 %v980_v7, %v3340_v62  ;;  %v3386_v16 = vpop.f32.mrf.mxu1  ;;  %v2122_v22 = vmul.f32 -1.442695, %v979_v10 }
 0x1d6   : > { %v2562_v33 = vpop.eup %2561  ;;  %2587 = vrcp.f32 %v1235_v27  ;;  %v1236_v34 = vadd.f32 1.0, %v2560_v29  ;;  %v3388_v19 = vpop.f32.mrf.mxu0  ;;  %v824_v58 = vadd.f32 %v3386_v16, %v3334_v59 }
 0x1d7   : > { %v2564_v38 = vpop.eup %2563  ;;  %2589 = vrcp.f32 %v1237_v30  ;;  %v1238_v39 = vadd.f32 1.0, %v2562_v33  ;;  %v2123_v26 = vmul.f32 -1.442695, %v981_v15  ;;  %v825_v27 = vpop.f32.mrf.mxu1  ;;  %v985_v2 = vadd.f32 %v3388_v19, %v3336_v60 }
 0x1d8   : > { %v2566_v42 = vpop.eup %2565  ;;  %2591 = vrcp.f32 %v1236_v34  ;;  %v986_v29 = vpop.f32.mrf.mxu0 }
 0x1d9   : > { %v2568_v45 = vpop.eup %2567  ;;  %2593 = vrcp.f32 %v1238_v39  ;;  %v2126_v16 = vmul.f32 -1.442695, %v985_v2 }
 0x1da   : > { %v2570_v49 = vpop.eup %2569  ;;  %2595 = vpow2.f32 %v2108_v35  ;;  %1550 = vmatprep.mubr.f32.mxu1 %v2568_v45  ;;  %v829_v35 = vpop.f32.mrf.mxu1 }
 0x1db   : > { %v2572_v53 = vpop.eup %2571  ;;  %2597 = vpow2.f32 %v2110_v40  ;;  %1695 = vmatprep.mubr.f32.mxu0 %v2570_v49  ;;  %1551 = vmatmul.mubr.f32.vlgmr.msra.gmra.mxu1 %v2564_v38  ;;  %v990_v38 = vpop.f32.mrf.mxu0 }
 0x1dc   : > { %v2574_v56 = vpop.eup %2573  ;;  %2599 = vpow2.f32 %v2109_v43  ;;  %1696 = vmatmul.mubr.f32.vlgmr.msra.gmra.mxu0 %v2566_v42  ;;  %2450 = vmatpush3.msra.mxu1 %v3361_v54  ;;  %v831_v45 = vpop.f32.mrf.mxu1 }
 0x1dd   : > { %v2576_v0 = vpop.eup %2575  ;;  %2601 = vpow2.f32 %v2111_v46  ;;  %2443 = vmatprep.subr.mxu1 %v1782_v63  ;;  %2403 = vmatpush3.msra.mxu0 %v3361_v54  ;;  %v820_v54 = vadd.f32 %v819_v3, %v3338_v61  ;;  %v992_v48 = vpop.f32.mrf.mxu0 }
 0x1de   : > { %v2578_v4 = vpop.eup %2577  ;;  %2603 = vpow2.f32 %v2112_v50  ;;  %1555 = vmatprep.mubr.f32.mxu1 %v2576_v0  ;;  %2451 = vmatpush3.msra.mxu1 %v1782_v63  ;;  %v835_v55 = vpop.f32.mrf.mxu1 }
 0x1df   : > { %v2580_v8 = vpop.eup %2579  ;;  %2605 = vpow2.f32 %v2114_v20  ;;  %1700 = vmatprep.mubr.f32.mxu0 %v2578_v4  ;;  %1556 = vmatmul.mubr.f32.gmra.mxu1 %v2572_v53  ;;  %v2121_v24 = vmul.f32 -1.442695, %v820_v54  ;;  %v830_v54 = vadd.f32 %v829_v35, %v3334_v59 }
 0x1e0   : > { %v2582_v11 = vpop.eup %2581  ;;  %2607 = vpow2.f32 %v2113_v57  ;;  %1701 = vmatmul.mubr.f32.gmra.mxu0 %v2574_v56  ;;  %2404 = vmatprep.subr.mxu0 %v1782_v63 }
 0x1e1   : > { %v2584_v13 = vpop.eup %2583  ;;  %2609 = vpow2.f32 %v2115_v1  ;;  %2405 = vmatpush3.msra.mxu0 %v1782_v63  ;;  %v996_v63 = vpop.f32.mrf.mxu0 }
 0x1e2   : > { %v2586_v18 = vpop.eup %2585  ;;  %2611 = vpow2.f32 %v2116_v5  ;;  %1560 = vmatprep.mubr.f32.mxu1 %v2584_v13  ;;  %v826_v5 = vadd.f32 %v825_v27, %v3338_v61  ;;  %v2128_v27 = vmul.f32 -1.442695, %v830_v54 }
 0x1e3   : > { %v2588_v21 = vpop.eup %2587  ;;  %2613 = vpow2.f32 %v2118_v9  ;;  %1705 = vmatprep.mubr.f32.mxu0 %v2586_v18  ;;  %1561 = vmatmul.mubr.f32.gmra.mxu1 %v2580_v8  ;;  %v987_v8 = vadd.f32 %v986_v29, %v3340_v62  ;;  %v837_v9 = vpop.f32.mrf.mxu1  ;;  %v991_v18 = vadd.f32 %v990_v38, %v3336_v60 }
 0x1e4   : > { %v2590_v23 = vpop.eup %2589  ;;  %2615 = vpow2.f32 %v2117_v12  ;;  %1706 = vmatmul.mubr.f32.gmra.mxu0 %v2582_v11  ;;  %v2124_v12 = vmul.f32 -1.442695, %v824_v58  ;;  %v998_v13 = vpop.f32.mrf.mxu0  ;;  %v2125_v19 = vmul.f32 -1.442695, %v826_v5  ;;  %v838_v35 = vadd.f32 %v837_v9, %v3338_v61 }
 0x1e5   : > { %v2592_v25 = vpop.eup %2591  ;;  %2617 = vpow2.f32 %v2119_v14  ;;  %v999_v38 = vadd.f32 %v998_v13, %v3340_v62 }
 0x1e6   : > { %v2594_v28 = vpop.eup %2593  ;;  %2619 = vpow2.f32 %v2120_v17  ;;  %1565 = vmatprep.mubr.f32.mxu1 %v2592_v25  ;;  %v841_v25 = vpop.f32.mrf.mxu1 }
 0x1e7   : > { %v2596_v30 = vpop.eup %2595  ;;  %2621 = vpow2.f32 %v2122_v22  ;;  %1710 = vmatprep.mubr.f32.mxu0 %v2594_v28  ;;  %1566 = vmatmul.mubr.f32.gmra.mxu1 %v2588_v21  ;;  %v832_v21 = vadd.f32 %v831_v45, %v3338_v61  ;;  %v836_v28 = vadd.f32 %v835_v55, %v3334_v59  ;;  %v1002_v29 = vpop.f32.mrf.mxu0 }
 0x1e8   : > { %v2598_v31 = vpop.eup %2597  ;;  %v1239_v32 = vadd.f32 1.0, %v2596_v30  ;;  %2623 = vpow2.f32 %v2121_v24  ;;  %1711 = vmatmul.mubr.f32.gmra.mxu0 %v2590_v23  ;;  %v2127_v23 = vmul.f32 -1.442695, %v987_v8  ;;  %v993_v24 = vadd.f32 %v992_v48, %v3340_v62 }
 0x1e9   : > { %v2600_v33 = vpop.eup %2599  ;;  %v1241_v34 = vadd.f32 1.0, %v2598_v31  ;;  %2625 = vpow2.f32 %v2123_v26  ;;  %v2130_v31 = vmul.f32 -1.442695, %v991_v18  ;;  %v2133_v48 = vmul.f32 -1.442695, %v838_v35 }
 0x1ea   : > { %v2602_v36 = vpop.eup %2601  ;;  %2627 = vrcp.f32 %v1239_v32  ;;  %v1240_v37 = vadd.f32 1.0, %v2600_v33  ;;  %v997_v32 = vadd.f32 %v996_v63, %v3336_v60 }
 0x1eb   : > { %v2604_v39 = vpop.eup %2603  ;;  %2629 = vrcp.f32 %v1241_v34  ;;  %v1242_v40 = vadd.f32 1.0, %v2602_v36  ;;  %v2129_v34 = vmul.f32 -1.442695, %v832_v21 }
 0x1ec   : > { %v2606_v41 = vpop.eup %2605  ;;  %2631 = vrcp.f32 %v1240_v37  ;;  %v1243_v42 = vadd.f32 1.0, %v2604_v39  ;;  %v2131_v37 = vmul.f32 -1.442695, %v993_v24  ;;  %v843_v39 = vpop.f32.mrf.mxu1  ;;  %v2134_v45 = vmul.f32 -1.442695, %v997_v32 }
 0x1ed   : > { %v2608_v43 = vpop.eup %2607  ;;  %2633 = vrcp.f32 %v1242_v40  ;;  %v1245_v44 = vadd.f32 1.0, %v2606_v41  ;;  %v2132_v41 = vmul.f32 -1.442695, %v836_v28 }
 0x1ee   : > { %v2610_v46 = vpop.eup %2609  ;;  %2635 = vrcp.f32 %v1243_v42  ;;  %v1244_v47 = vadd.f32 1.0, %v2608_v43  ;;  %v842_v42 = vadd.f32 %v841_v25, %v3334_v59  ;;  %v1004_v43 = vpop.f32.mrf.mxu0 }
 0x1ef   : > { %v2612_v49 = vpop.eup %2611  ;;  %2637 = vrcp.f32 %v1245_v44  ;;  %v1246_v50 = vadd.f32 1.0, %v2610_v46  ;;  %v1003_v46 = vadd.f32 %v1002_v29, %v3336_v60 }
 0x1f0   : > { %v2614_v51 = vpop.eup %2613  ;;  %2639 = vrcp.f32 %v1244_v47  ;;  %v1247_v52 = vadd.f32 1.0, %v2612_v49  ;;  %v844_v49 = vadd.f32 %v843_v39, %v3338_v61  ;;  %v2136_v55 = vmul.f32 -1.442695, %v842_v42 }
 0x1f1   : > { %v2616_v53 = vpop.eup %2615  ;;  %2641 = vrcp.f32 %v1246_v50  ;;  %v1249_v20 = vadd.f32 1.0, %v2614_v51  ;;  %v2135_v51 = vmul.f32 -1.442695, %v999_v38  ;;  %v2138_v58 = vmul.f32 -1.442695, %v1003_v46 }
 0x1f2   : > { %v2618_v56 = vpop.eup %2617  ;;  %2643 = vrcp.f32 %v1247_v52  ;;  %v1248_v57 = vadd.f32 1.0, %v2616_v53  ;;  %v1005_v52 = vadd.f32 %v1004_v43, %v3340_v62  ;;  %v3408_v53 = vpop.f32.mrf.mxu1 }
 0x1f3   : > { %v2620_v0 = vpop.eup %2619  ;;  %2645 = vrcp.f32 %v1249_v20  ;;  %v1250_v1 = vadd.f32 1.0, %v2618_v56  ;;  %v3410_v56 = vpop.f32.mrf.mxu0 }
 0x1f4   : > { %v2622_v3 = vpop.eup %2621  ;;  %2647 = vrcp.f32 %v1248_v57  ;;  %v1251_v4 = vadd.f32 1.0, %v2620_v0  ;;  %v2137_v0 = vmul.f32 -1.442695, %v844_v49  ;;  %v2139_v2 = vmul.f32 -1.442695, %v1005_v52 }
 0x1f5   : > { %v2624_v6 = vpop.eup %2623  ;;  %2649 = vrcp.f32 %v1250_v1  ;;  %v1253_v7 = vadd.f32 1.0, %v2622_v3  ;;  %v849_v3 = vpop.f32.mrf.mxu1  ;;  %v1009_v38 = vadd.f32 %v3410_v56, %v3336_v60 }
 0x1f6   : > { %v2626_v10 = vpop.eup %2625  ;;  %2651 = vrcp.f32 %v1251_v4  ;;  %v1252_v11 = vadd.f32 1.0, %v2624_v6  ;;  %v1010_v5 = vpop.f32.mrf.mxu0 }
 0x1f7   : > { %v2628_v14 = vpop.eup %2627  ;;  %2653 = vrcp.f32 %v1253_v7  ;;  %v1254_v15 = vadd.f32 1.0, %v2626_v10 }
 0x1f8   : > { %v2630_v17 = vpop.eup %2629  ;;  %2655 = vrcp.f32 %v1252_v11  ;;  %v853_v11 = vpop.f32.mrf.mxu1 }
 0x1f9   : > { %v2632_v22 = vpop.eup %2631  ;;  %2657 = vrcp.f32 %v1254_v15  ;;  %v1014_v13 = vpop.f32.mrf.mxu0  ;;  %v854_v49 = vadd.f32 %v853_v11, %v3334_v59 }
 0x1fa   : > { %v2634_v26 = vpop.eup %2633  ;;  %2659 = vpow2.f32 %v2124_v12  ;;  %1570 = vmatprep.mubr.f32.mxu1 %v2632_v22  ;;  %v855_v21 = vpop.f32.mrf.mxu1 }
 0x1fb   : > { %v2636_v30 = vpop.eup %2635  ;;  %2661 = vpow2.f32 %v2126_v16  ;;  %1715 = vmatprep.mubr.f32.mxu0 %v2634_v26  ;;  %1571 = vmatmul.mubr.f32.gmra.mxu1 %v2628_v14  ;;  %v1016_v24 = vpop.f32.mrf.mxu0 }
 0x1fc   : > { %v2638_v33 = vpop.eup %2637  ;;  %2663 = vpow2.f32 %v2125_v19  ;;  %1716 = vmatmul.mubr.f32.gmra.mxu0 %v2630_v17 }
 0x1fd   : > { %v2640_v36 = vpop.eup %2639  ;;  %2665 = vpow2.f32 %v2127_v23  ;;  %v1020_v35 = vpop.f32.mrf.mxu0 }
 0x1fe   : > { %v2642_v40 = vpop.eup %2641  ;;  %2667 = vpow2.f32 %v2128_v27  ;;  %1575 = vmatprep.mubr.f32.mxu1 %v2640_v36 }
 0x1ff   : > { %v2644_v44 = vpop.eup %2643  ;;  %2669 = vpow2.f32 %v2130_v31  ;;  %1720 = vmatprep.mubr.f32.mxu0 %v2642_v40  ;;  %1576 = vmatmul.mubr.f32.gmra.mxu1 %v2636_v30  ;;  %v859_v31 = vpop.f32.mrf.mxu1 }
 0x200   : > { %v2646_v47 = vpop.eup %2645  ;;  %2671 = vpow2.f32 %v2129_v34  ;;  %1721 = vmatmul.mubr.f32.gmra.mxu0 %v2638_v33  ;;  %v848_v34 = vadd.f32 %v3408_v53, %v3334_v59  ;;  %v2142_v53 = vmul.f32 -1.442695, %v1009_v38  ;;  %v1778_v38 = vld [vmem:[%s3534_s7 + $0x10] sm:$0xff] }
 0x201   : > { %v2648_v50 = vpop.eup %2647  ;;  %2673 = vpow2.f32 %v2131_v37 }
 0x202   : > { %v2650_v20 = vpop.eup %2649  ;;  %2675 = vpow2.f32 %v2132_v41  ;;  %1580 = vmatprep.mubr.f32.mxu1 %v2648_v50  ;;  %v850_v41 = vadd.f32 %v849_v3, %v3338_v61  ;;  %v1022_v50 = vpop.f32.mrf.mxu0  ;;  %v2144_v3 = vmul.f32 -1.442695, %v854_v49 }
 0x203   : > { %v2652_v57 = vpop.eup %2651  ;;  %2677 = vpow2.f32 %v2134_v45  ;;  %1725 = vmatprep.mubr.f32.mxu0 %v2650_v20  ;;  %1581 = vmatmul.mubr.f32.gmra.mxu1 %v2644_v44  ;;  %v1011_v44 = vadd.f32 %v1010_v5, %v3340_v62  ;;  %v861_v45 = vpop.f32.mrf.mxu1  ;;  %v1015_v20 = vadd.f32 %v1014_v13, %v3336_v60 }
 0x204   : > { %v2654_v63 = vpop.eup %2653  ;;  %2679 = vpow2.f32 %v2133_v48  ;;  %1726 = vmatmul.mubr.f32.gmra.mxu0 %v2646_v47  ;;  %v2140_v48 = vmul.f32 -1.442695, %v848_v34  ;;  %v2141_v56 = vmul.f32 -1.442695, %v850_v41  ;;  %v1026_v5 = vpop.f32.mrf.mxu0  ;;  %v862_v11 = vadd.f32 %v861_v45, %v3338_v61 }
 0x205   : > { %v2656_v1 = vpop.eup %2655  ;;  %2681 = vpow2.f32 %v2135_v51 }
 0x206   : > { %v2658_v4 = vpop.eup %2657  ;;  %2683 = vpow2.f32 %v2136_v55  ;;  %1585 = vmatprep.mubr.f32.mxu1 %v2656_v1  ;;  %v865_v1 = vpop.f32.mrf.mxu1 }
 0x207   : > { %v2660_v6 = vpop.eup %2659  ;;  %2685 = vpow2.f32 %v2138_v58  ;;  %1730 = vmatprep.mubr.f32.mxu0 %v2658_v4  ;;  %1586 = vmatmul.mubr.f32.gmra.mxu1 %v2652_v57  ;;  %v856_v57 = vadd.f32 %v855_v21, %v3338_v61  ;;  %v860_v4 = vadd.f32 %v859_v31, %v3334_v59 }
 0x208   : > { %v2662_v7 = vpop.eup %2661  ;;  %v1255_v8 = vadd.f32 1.0, %v2660_v6  ;;  %2687 = vpow2.f32 %v2137_v0  ;;  %1731 = vmatmul.mubr.f32.gmra.mxu0 %v2654_v63  ;;  %v2143_v63 = vmul.f32 -1.442695, %v1011_v44  ;;  %v1017_v0 = vadd.f32 %v1016_v24, %v3340_v62 }
 0x209   : > { %v2664_v9 = vpop.eup %2663  ;;  %v1257_v10 = vadd.f32 1.0, %v2662_v7  ;;  %2689 = vpow2.f32 %v2139_v2  ;;  %v2146_v7 = vmul.f32 -1.442695, %v1015_v20 }
 0x20a   : > { %v2666_v12 = vpop.eup %2665  ;;  %2691 = vrcp.f32 %v1255_v8  ;;  %v1256_v54 = vadd.f32 1.0, %v2664_v9  ;;  %v1021_v8 = vadd.f32 %v1020_v35, %v3336_v60  ;;  %v2147_v13 = vmul.f32 -1.442695, %v1017_v0 }
 0x20b   : > { %v2668_v14 = vpop.eup %2667  ;;  %2693 = vrcp.f32 %v1257_v10  ;;  %v1258_v15 = vadd.f32 1.0, %v2666_v12  ;;  %v2145_v10 = vmul.f32 -1.442695, %v856_v57  ;;  %v1781_v12 = vld [vmem:[%s3534_s7 + $0x28] sm:$0xff] }
 0x20c   : > { %v2670_v16 = vpop.eup %2669  ;;  %2695 = vrcp.f32 %v1256_v54  ;;  %v1259_v18 = vadd.f32 1.0, %v2668_v14  ;;  %v1023_v14 = vadd.f32 %v1022_v50, %v3340_v62  ;;  %2406 = vmatprep.subr.mxu0 %v1781_v12  ;;  %2444 = vmatprep.subr.mxu1 %v1781_v12 }
 0x20d   : > { %v2672_v17 = vpop.eup %2671  ;;  %2697 = vrcp.f32 %v1258_v15  ;;  %v1261_v19 = vadd.f32 1.0, %v2670_v16  ;;  %v867_v15 = vpop.f32.mrf.mxu1  ;;  %2407 = vmatpush3.msra.mxu0 %v1781_v12  ;;  %2452 = vmatpush3.msra.mxu1 %v1781_v12 }
 0x20e   : > { %v2674_v22 = vpop.eup %2673  ;;  %2699 = vrcp.f32 %v1259_v18  ;;  %v1260_v23 = vadd.f32 1.0, %v2672_v17  ;;  %v2148_v18 = vmul.f32 -1.442695, %v860_v4  ;;  %v866_v17 = vadd.f32 %v865_v1, %v3334_v59 }
 0x20f   : > { %v2676_v25 = vpop.eup %2675  ;;  %2701 = vrcp.f32 %v1261_v19  ;;  %v1262_v26 = vadd.f32 1.0, %v2674_v22  ;;  %v1028_v19 = vpop.f32.mrf.mxu0  ;;  %v2150_v22 = vmul.f32 -1.442695, %v1021_v8  ;;  %v2151_v59 = vmul.f32 -1.442695, %v1023_v14 }
 0x210   : > { %v2678_v27 = vpop.eup %2677  ;;  %2703 = vrcp.f32 %v1260_v23  ;;  %v1263_v28 = vadd.f32 1.0, %v2676_v25  ;;  %v1027_v23 = vadd.f32 %v1026_v5, %v3336_v60  ;;  %v2149_v25 = vmul.f32 -1.442695, %v862_v11  ;;  %v1780_v60 = vld [vmem:[%s3534_s7 + $0x20] sm:$0xff] }
 0x211   : > { %v2680_v29 = vpop.eup %2679  ;;  %2705 = vrcp.f32 %v1262_v26  ;;  %v1265_v30 = vadd.f32 1.0, %v2678_v27  ;;  %v868_v26 = vadd.f32 %v867_v15, %v3338_v61  ;;  %v1779_v61 = vld [vmem:[%s3534_s7 + $0x18] sm:$0xff]  ;;  %2408 = vmatprep.subr.mxu0 %v1780_v60  ;;  %2445 = vmatprep.subr.mxu1 %v1780_v60 }
 0x212   : > { %v2682_v32 = vpop.eup %2681  ;;  %2707 = vrcp.f32 %v1263_v28  ;;  %v1264_v33 = vadd.f32 1.0, %v2680_v29  ;;  %v1029_v28 = vadd.f32 %v1028_v19, %v3340_v62  ;;  %2409 = vmatpush3.msra.mxu0 %v1780_v60  ;;  %2453 = vmatpush3.msra.mxu1 %v1780_v60 }
 0x213   : > { %v2684_v36 = vpop.eup %2683  ;;  %2709 = vrcp.f32 %v1265_v30  ;;  %v1266_v37 = vadd.f32 1.0, %v2682_v32  ;;  %v2152_v30 = vmul.f32 -1.442695, %v866_v17  ;;  %v2154_v32 = vmul.f32 -1.442695, %v1027_v23  ;;  %2410 = vmatprep.subr.mxu0 %v1779_v61  ;;  %2446 = vmatprep.subr.mxu1 %v1779_v61 }
 0x214   : > { %v2686_v39 = vpop.eup %2685  ;;  %2711 = vrcp.f32 %v1264_v33  ;;  %v1267_v40 = vadd.f32 1.0, %v2684_v36  ;;  %v2153_v62 = vmul.f32 -1.442695, %v868_v26  ;;  %v2155_v35 = vmul.f32 -1.442695, %v1029_v28  ;;  %2411 = vmatpush3.msra.mxu0 %v1779_v61  ;;  %2454 = vmatpush3.msra.mxu1 %v1779_v61 }
 0x215   : > { %v2688_v42 = vpop.eup %2687  ;;  %2713 = vrcp.f32 %v1266_v37  ;;  %v1269_v43 = vadd.f32 1.0, %v2686_v39  ;;  %2412 = vmatprep.subr.mxu0 %v1778_v38  ;;  %2447 = vmatprep.subr.mxu1 %v1778_v38 }
 0x216   : > { %v2690_v46 = vpop.eup %2689  ;;  %2715 = vrcp.f32 %v1267_v40  ;;  %v1268_v47 = vadd.f32 1.0, %v2688_v42  ;;  %v1777_v42 = vld [vmem:[%s3534_s7 + $0x8] sm:$0xff]  ;;  %2413 = vmatpush3.msra.mxu0 %v1778_v38  ;;  %2455 = vmatpush3.msra.mxu1 %v1778_v38 }
 0x217   : > { %v2692_v51 = vpop.eup %2691  ;;  %2717 = vrcp.f32 %v1269_v43  ;;  %v1270_v52 = vadd.f32 1.0, %v2690_v46  ;;  %2414 = vmatprep.subr.mxu0 %v1777_v42  ;;  %2448 = vmatprep.subr.mxu1 %v1777_v42 }
 0x218   : > { %v2694_v55 = vpop.eup %2693  ;;  %2719 = vrcp.f32 %v1268_v47  ;;  %2415 = vmatpush3.msra.mxu0 %v1777_v42  ;;  %2456 = vmatpush3.msra.mxu1 %v1777_v42 }
 0x219   : > { %v2696_v58 = vpop.eup %2695  ;;  %2721 = vrcp.f32 %v1270_v52 }
 0x21a   : > { %v2698_v2 = vpop.eup %2697  ;;  %2723 = vpow2.f32 %v2140_v48  ;;  %1590 = vmatprep.mubr.f32.mxu1 %v2696_v58  ;;  %v1776_v48 = vld [vmem:[%s3534_s7] sm:$0xff] }
 0x21b   : > { %v2700_v6 = vpop.eup %2699  ;;  %2725 = vpow2.f32 %v2142_v53  ;;  %1735 = vmatprep.mubr.f32.mxu0 %v2698_v2  ;;  %1591 = vmatmul.mubr.f32.gmra.mxu1 %v2692_v51 }
 0x21c   : > { %v2702_v9 = vpop.eup %2701  ;;  %2727 = vpow2.f32 %v2141_v56  ;;  %1736 = vmatmul.mubr.f32.gmra.mxu0 %v2694_v55  ;;  %2416 = vmatprep.subr.mxu0 %v1776_v48 }
 0x21d   : > { %v2704_v54 = vpop.eup %2703  ;;  %2729 = vpow2.f32 %v2143_v63  ;;  %2417 = vmatpush3.msra.mxu0 %v1776_v48  ;;  %2449 = vmatprep.subr.mxu1 %v1776_v48 }
 0x21e   : > { %v2706_v16 = vpop.eup %2705  ;;  %2731 = vpow2.f32 %v2144_v3  ;;  %1595 = vmatprep.mubr.f32.mxu1 %v2704_v54  ;;  %2457 = vmatpush3.msra.mxu1 %v1776_v48 }
 0x21f   : > { %v2708_v21 = vpop.eup %2707  ;;  %2733 = vpow2.f32 %v2146_v7  ;;  %1740 = vmatprep.mubr.f32.mxu0 %v2706_v16  ;;  %1596 = vmatmul.mubr.f32.gmra.mxu1 %v2700_v6 }
 0x220   : > { %v2710_v24 = vpop.eup %2709  ;;  %2735 = vpow2.f32 %v2145_v10  ;;  %1741 = vmatmul.mubr.f32.gmra.mxu0 %v2702_v9 }
 0x221   : > { %v2712_v27 = vpop.eup %2711  ;;  %2737 = vpow2.f32 %v2147_v13 }
 0x222   : > { %v2714_v29 = vpop.eup %2713  ;;  %2739 = vpow2.f32 %v2148_v18  ;;  %1600 = vmatprep.mubr.f32.mxu1 %v2712_v27 }
 0x223   : > { %v2716_v31 = vpop.eup %2715  ;;  %2741 = vpow2.f32 %v2150_v22  ;;  %1745 = vmatprep.mubr.f32.mxu0 %v2714_v29  ;;  %1601 = vmatmul.mubr.f32.gmra.mxu1 %v2708_v21  ;;  %v3451_v29 = vld [vmem:[%s3533_s6] ss:$0 sm:$0xff] }
 0x224   : > { %v2718_v33 = vpop.eup %2717  ;;  %2743 = vpow2.f32 %v2149_v25  ;;  %1746 = vmatmul.mubr.f32.gmra.mxu0 %v2710_v24 }
 0x225   : > { %v2720_v34 = vpop.eup %2719  ;;  %2745 = vpow2.f32 %v2151_v59 }
 0x226   : > { %v2722_v36 = vpop.eup %2721  ;;  %2747 = vpow2.f32 %v2152_v30  ;;  %1605 = vmatprep.mubr.f32.mxu1 %v2720_v34 }
 0x227   : > { %v2724_v37 = vpop.eup %2723  ;;  %2749 = vpow2.f32 %v2154_v32  ;;  %1750 = vmatprep.mubr.f32.mxu0 %v2722_v36  ;;  %1606 = vmatmul.mubr.f32.gmra.mxu1 %v2716_v31 }
 0x228   : > { %v2726_v39 = vpop.eup %2725  ;;  %v1271_v40 = vadd.f32 1.0, %v2724_v37  ;;  %2751 = vpow2.f32 %v2153_v62  ;;  %1751 = vmatmul.mubr.f32.gmra.mxu0 %v2718_v33 }
 0x229   : > { %v2728_v41 = vpop.eup %2727  ;;  %2753 = vpow2.f32 %v2155_v35  ;;  %v1273_v44 = vadd.f32 1.0, %v2726_v39 }
 0x22a   : > { %v2730_v43 = vpop.eup %2729  ;;  %v1272_v45 = vadd.f32 1.0, %v2728_v41  ;;  %2755 = vrcp.f32 %v1271_v40 }
 0x22b   : > { %v2732_v46 = vpop.eup %2731  ;;  %v1274_v47 = vadd.f32 1.0, %v2730_v43 }
 0x22c   : > { %v2734_v49 = vpop.eup %2733  ;;  %2757 = vrcp.f32 %v1272_v45  ;;  %v1275_v50 = vadd.f32 1.0, %v2732_v46 }
 0x22d   : > { %v2736_v51 = vpop.eup %2735  ;;  %2759 = vrcp.f32 %v1274_v47  ;;  %v1277_v53 = vadd.f32 1.0, %v2734_v49 }
 0x22e   : > { %v2738_v52 = vpop.eup %2737  ;;  %2761 = vrcp.f32 %v1273_v44  ;;  %v1276_v20 = vadd.f32 1.0, %v2736_v51 }
 0x22f   : > { %v2740_v55 = vpop.eup %2739  ;;  %2763 = vrcp.f32 %v1275_v50  ;;  %v1278_v56 = vadd.f32 1.0, %v2738_v52 }
 0x230   : > { %v2742_v57 = vpop.eup %2741  ;;  %2765 = vrcp.f32 %v1276_v20  ;;  %v1279_v58 = vadd.f32 1.0, %v2740_v55 }
 0x231   : > { %v2744_v63 = vpop.eup %2743  ;;  %2767 = vrcp.f32 %v1278_v56  ;;  %v1281_v1 = vadd.f32 1.0, %v2742_v57 }
 0x232   : > { %v2746_v0 = vpop.eup %2745  ;;  %2769 = vrcp.f32 %v1277_v53  ;;  %v1280_v2 = vadd.f32 1.0, %v2744_v63 }
 0x233   : > { %v2748_v3 = vpop.eup %2747  ;;  %2771 = vrcp.f32 %v1279_v58  ;;  %v1282_v4 = vadd.f32 1.0, %v2746_v0 }
 0x234   : > { %v2750_v5 = vpop.eup %2749  ;;  %2773 = vrcp.f32 %v1280_v2  ;;  %v1283_v6 = vadd.f32 1.0, %v2748_v3 }
 0x235   : > { %v2752_v7 = vpop.eup %2751  ;;  %2775 = vrcp.f32 %v1282_v4  ;;  %v1285_v9 = vadd.f32 1.0, %v2750_v5 }
 0x236   : > { %v2754_v8 = vpop.eup %2753  ;;  %2777 = vrcp.f32 %v1281_v1  ;;  %v1284_v10 = vadd.f32 1.0, %v2752_v7 }
 0x237   : > { %2779 = vrcp.f32 %v1283_v6  ;;  %v1286_v11 = vadd.f32 1.0, %v2754_v8  ;;  %v2756_v12 = vpop.eup %2755 }
 0x238   : > { %2781 = vrcp.f32 %v1284_v10 }
 0x239   : > { %v2758_v54 = vpop.eup %2757  ;;  %2783 = vrcp.f32 %v1286_v11 }
 0x23a   : > { %v2760_v13 = vpop.eup %2759  ;;  %2785 = vrcp.f32 %v1285_v9  ;;  %1610 = vmatprep.mubr.f32.mxu1 %v2758_v54 }
 0x23b   : > { %v2762_v14 = vpop.eup %2761  ;;  %1755 = vmatprep.mubr.f32.mxu0 %v2760_v13  ;;  %1611 = vmatmul.mubr.f32.gmra.mxu1 %v2756_v12 }
 0x23c   : > { %v2764_v15 = vpop.eup %2763  ;;  %1756 = vmatmul.mubr.f32.gmra.mxu0 %v2762_v14 }
 0x23d   : > { %v2766_v16 = vpop.eup %2765 }
 0x23e   : > { %v2768_v18 = vpop.eup %2767  ;;  %1615 = vmatprep.mubr.f32.mxu1 %v2766_v16 }
 0x23f   : > { %v2770_v17 = vpop.eup %2769  ;;  %1760 = vmatprep.mubr.f32.mxu0 %v2768_v18  ;;  %1616 = vmatmul.mubr.f32.gmra.mxu1 %v2764_v15 }
 0x240   : > { %v2772_v19 = vpop.eup %2771  ;;  %1761 = vmatmul.mubr.f32.gmra.mxu0 %v2770_v17 }
 0x241   : > { %v2774_v21 = vpop.eup %2773 }
 0x242   : > { %v2776_v22 = vpop.eup %2775  ;;  %1620 = vmatprep.mubr.f32.mxu1 %v2774_v21 }
 0x243   : > { %v2778_v23 = vpop.eup %2777  ;;  %1765 = vmatprep.mubr.f32.mxu0 %v2776_v22  ;;  %1621 = vmatmul.mubr.f32.gmra.mxu1 %v2772_v19 }
 0x244   : > { %v2780_v24 = vpop.eup %2779  ;;  %1766 = vmatmul.mubr.f32.gmra.mxu0 %v2778_v23 }
 0x245   : > { %v2782_v25 = vpop.eup %2781 }
 0x246   : > { %v2784_v26 = vpop.eup %2783  ;;  %1625 = vmatprep.mubr.f32.mxu1 %v2782_v25 }
 0x247   : > { %v2786_v27 = vpop.eup %2785  ;;  %1770 = vmatprep.mubr.f32.mxu0 %v2784_v26  ;;  %1626 = vmatmul.mubr.f32.gmra.mxu1 %v2780_v24 }
 0x248   : > { %1771 = vmatmul.mubr.f32.gmra.mxu0 %v2786_v27 }
 0x29b   : > { %v2224_v59 = vpop.f32.mrf.mxu1 }
 0x29c   : > { %v2304_v28 = vpop.f32.mrf.mxu0 }
 0x29d   : > { %v2225_v30 = vpop.f32.mrf.mxu1 }
 0x29e   : > { %v2226_v60 = vadd.f32 %v2225_v30, %v2224_v59  ;;  %v2305_v31 = vpop.f32.mrf.mxu0 }
 0x29f   : > { %v2227_v32 = vpop.f32.mrf.mxu1  ;;  %v2306_v33 = vadd.f32 %v2305_v31, %v2304_v28 }
 0x2a0   : > { %v1553_v61 = vadd.f32 %v2226_v60, %v3451_v29  ;;  %v2307_v62 = vpop.f32.mrf.mxu0 }
 0x2a1   : > { %v2228_v34 = vpop.f32.mrf.mxu1 }
 0x2a2   : > { %v1698_v35 = vadd.f32 %v2306_v33, %v1553_v61  ;;  %v2229_v36 = vadd.f32 %v2228_v34, %v2227_v32  ;;  %v2308_v37 = vpop.f32.mrf.mxu0 }
 0x2a3   : > { %v2230_v38 = vpop.f32.mrf.mxu1  ;;  %v2309_v40 = vadd.f32 %v2308_v37, %v2307_v62 }
 0x2a4   : > { %v1558_v39 = vadd.f32 %v2229_v36, %v3451_v29  ;;  %v2310_v41 = vpop.f32.mrf.mxu0  ;;  %2418 = vmatprep.mubr.msk.f32.mxu0 %vm1784_vm1, %v1698_v35 }
 0x2a5   : > { %v2231_v42 = vpop.f32.mrf.mxu1 }
 0x2a6   : > { %v1703_v43 = vadd.f32 %v2309_v40, %v1558_v39  ;;  %v2232_v44 = vadd.f32 %v2231_v42, %v2230_v38  ;;  %v2311_v45 = vpop.f32.mrf.mxu0 }
 0x2a7   : > { %v2233_v46 = vpop.f32.mrf.mxu1  ;;  %v2312_v48 = vadd.f32 %v2311_v45, %v2310_v41 }
 0x2a8   : > { %v1563_v47 = vadd.f32 %v2232_v44, %v3451_v29  ;;  %v2313_v49 = vpop.f32.mrf.mxu0  ;;  %2419 = vmatmul.mubr.msk.f32.vlgmr.msra.gmra.mxu0 %vm1784_vm1, %v1703_v43 }
 0x2a9   : > { %v2234_v50 = vpop.f32.mrf.mxu1 }
 0x2aa   : > { %v1708_v51 = vadd.f32 %v2312_v48, %v1563_v47  ;;  %v2235_v52 = vadd.f32 %v2234_v50, %v2233_v46  ;;  %v2314_v53 = vpop.f32.mrf.mxu0 }
 0x2ab   : > { %v2315_v55 = vadd.f32 %v2314_v53, %v2313_v49 }
 0x2ac   : > { %v1568_v20 = vadd.f32 %v2235_v52, %v3451_v29  ;;  %2421 = vmatprep.mubr.msk.f32.mxu0 %vm1784_vm1, %v1708_v51 }
 0x2ae   : > { %v1713_v56 = vadd.f32 %v2315_v55, %v1568_v20 }
 0x2b0   : > { %2422 = vmatmul.mubr.msk.f32.gmra.mxu0 %vm1784_vm1, %v1713_v56 }
 0x2bb   : > { %v2236_v57 = vpop.f32.mrf.mxu1 }
 0x2bc   : > { %v2316_v58 = vpop.f32.mrf.mxu0 }
 0x2bd   : > { %v2237_v63 = vpop.f32.mrf.mxu1 }
 0x2be   : > { %v2238_v0 = vadd.f32 %v2237_v63, %v2236_v57  ;;  %v2317_v1 = vpop.f32.mrf.mxu0 }
 0x2bf   : > { %v2239_v2 = vpop.f32.mrf.mxu1  ;;  %v2318_v4 = vadd.f32 %v2317_v1, %v2316_v58 }
 0x2c0   : > { %v1573_v3 = vadd.f32 %v2238_v0, %v3451_v29  ;;  %v2319_v5 = vpop.f32.mrf.mxu0 }
 0x2c1   : > { %v2240_v6 = vpop.f32.mrf.mxu1 }
 0x2c2   : > { %v1718_v7 = vadd.f32 %v2318_v4, %v1573_v3  ;;  %v2241_v8 = vadd.f32 %v2240_v6, %v2239_v2  ;;  %v2320_v9 = vpop.f32.mrf.mxu0 }
 0x2c3   : > { %v2242_v10 = vpop.f32.mrf.mxu1  ;;  %v2321_v12 = vadd.f32 %v2320_v9, %v2319_v5 }
 0x2c4   : > { %v1578_v11 = vadd.f32 %v2241_v8, %v3451_v29  ;;  %v2322_v54 = vpop.f32.mrf.mxu0  ;;  %2424 = vmatprep.mubr.msk.f32.mxu0 %vm1784_vm1, %v1718_v7 }
 0x2c5   : > { %v2243_v13 = vpop.f32.mrf.mxu1 }
 0x2c6   : > { %v1723_v14 = vadd.f32 %v2321_v12, %v1578_v11  ;;  %v2244_v15 = vadd.f32 %v2243_v13, %v2242_v10  ;;  %v2323_v16 = vpop.f32.mrf.mxu0 }
 0x2c7   : > { %v2245_v18 = vpop.f32.mrf.mxu1  ;;  %v2324_v19 = vadd.f32 %v2323_v16, %v2322_v54 }
 0x2c8   : > { %v1583_v17 = vadd.f32 %v2244_v15, %v3451_v29  ;;  %v2325_v21 = vpop.f32.mrf.mxu0  ;;  %2425 = vmatmul.mubr.msk.f32.gmra.mxu0 %vm1784_vm1, %v1723_v14 }
 0x2c9   : > { %v2246_v22 = vpop.f32.mrf.mxu1 }
 0x2ca   : > { %v1728_v23 = vadd.f32 %v2324_v19, %v1583_v17  ;;  %v2247_v24 = vadd.f32 %v2246_v22, %v2245_v18  ;;  %v2326_v25 = vpop.f32.mrf.mxu0 }
 0x2cb   : > { %v2327_v27 = vadd.f32 %v2326_v25, %v2325_v21 }
 0x2cc   : > { %v1588_v26 = vadd.f32 %v2247_v24, %v3451_v29  ;;  %2427 = vmatprep.mubr.msk.f32.mxu1 %vm1784_vm1, %v1728_v23 }
 0x2ce   : > { %v1733_v59 = vadd.f32 %v2327_v27, %v1588_v26 }
 0x2d0   : > { %2428 = vmatmul.mubr.msk.f32.vlgmr.msra.gmra.mxu1 %vm1784_vm1, %v1733_v59 }
 0x2db   : > { %v2248_v28 = vpop.f32.mrf.mxu1 }
 0x2dc   : > { %v2328_v30 = vpop.f32.mrf.mxu0 }
 0x2dd   : > { %v2249_v60 = vpop.f32.mrf.mxu1 }
 0x2de   : > { %v2250_v31 = vadd.f32 %v2249_v60, %v2248_v28  ;;  %v2329_v32 = vpop.f32.mrf.mxu0 }
 0x2df   : > { %v2251_v61 = vpop.f32.mrf.mxu1  ;;  %v2330_v62 = vadd.f32 %v2329_v32, %v2328_v30 }
 0x2e0   : > { %v1593_v33 = vadd.f32 %v2250_v31, %v3451_v29  ;;  %v2331_v34 = vpop.f32.mrf.mxu0 }
 0x2e1   : > { %v2252_v35 = vpop.f32.mrf.mxu1 }
 0x2e2   : > { %v1738_v36 = vadd.f32 %v2330_v62, %v1593_v33  ;;  %v2253_v37 = vadd.f32 %v2252_v35, %v2251_v61  ;;  %v2332_v38 = vpop.f32.mrf.mxu0 }
 0x2e3   : > { %v2254_v39 = vpop.f32.mrf.mxu1  ;;  %v2333_v41 = vadd.f32 %v2332_v38, %v2331_v34 }
 0x2e4   : > { %v1598_v40 = vadd.f32 %v2253_v37, %v3451_v29  ;;  %v2334_v42 = vpop.f32.mrf.mxu0  ;;  %2430 = vmatprep.mubr.msk.f32.mxu1 %vm1784_vm1, %v1738_v36 }
 0x2e5   : > { %v2255_v43 = vpop.f32.mrf.mxu1 }
 0x2e6   : > { %v1743_v44 = vadd.f32 %v2333_v41, %v1598_v40  ;;  %v2256_v45 = vadd.f32 %v2255_v43, %v2254_v39  ;;  %v2335_v46 = vpop.f32.mrf.mxu0 }
 0x2e7   : > { %v2257_v47 = vpop.f32.mrf.mxu1  ;;  %v2336_v49 = vadd.f32 %v2335_v46, %v2334_v42 }
 0x2e8   : > { %v1603_v48 = vadd.f32 %v2256_v45, %v3451_v29  ;;  %v2337_v50 = vpop.f32.mrf.mxu0  ;;  %2431 = vmatmul.mubr.msk.f32.gmra.mxu1 %vm1784_vm1, %v1743_v44 }
 0x2e9   : > { %v2258_v51 = vpop.f32.mrf.mxu1 }
 0x2ea   : > { %v1748_v52 = vadd.f32 %v2336_v49, %v1603_v48  ;;  %v2259_v53 = vadd.f32 %v2258_v51, %v2257_v47  ;;  %v2338_v20 = vpop.f32.mrf.mxu0 }
 0x2eb   : > { %v2339_v56 = vadd.f32 %v2338_v20, %v2337_v50 }
 0x2ec   : > { %v1608_v55 = vadd.f32 %v2259_v53, %v3451_v29  ;;  %2433 = vmatprep.mubr.msk.f32.mxu1 %vm1784_vm1, %v1748_v52 }
 0x2ee   : > { %v1753_v57 = vadd.f32 %v2339_v56, %v1608_v55 }
 0x2f0   : > { %2434 = vmatmul.mubr.msk.f32.gmra.mxu1 %vm1784_vm1, %v1753_v57 }
 0x2fb   : > { %v2260_v58 = vpop.f32.mrf.mxu1 }
 0x2fc   : > { %v2340_v63 = vpop.f32.mrf.mxu0 }
 0x2fd   : > { %v2261_v0 = vpop.f32.mrf.mxu1 }
 0x2fe   : > { %v2262_v1 = vadd.f32 %v2261_v0, %v2260_v58  ;;  %v2341_v2 = vpop.f32.mrf.mxu0 }
 0x2ff   : > { %v2263_v3 = vpop.f32.mrf.mxu1  ;;  %v2342_v5 = vadd.f32 %v2341_v2, %v2340_v63 }
 0x300   : > { %v1613_v4 = vadd.f32 %v2262_v1, %v3451_v29  ;;  %v2343_v6 = vpop.f32.mrf.mxu0 }
 0x301   : > { %v2264_v7 = vpop.f32.mrf.mxu1 }
 0x302   : > { %v1758_v8 = vadd.f32 %v2342_v5, %v1613_v4  ;;  %v2265_v9 = vadd.f32 %v2264_v7, %v2263_v3  ;;  %v2344_v10 = vpop.f32.mrf.mxu0 }
 0x303   : > { %v2266_v11 = vpop.f32.mrf.mxu1  ;;  %v2345_v54 = vadd.f32 %v2344_v10, %v2343_v6 }
 0x304   : > { %v1618_v12 = vadd.f32 %v2265_v9, %v3451_v29  ;;  %v2346_v13 = vpop.f32.mrf.mxu0  ;;  %2436 = vmatprep.mubr.msk.f32.mxu1 %vm1784_vm1, %v1758_v8 }
 0x305   : > { %v2267_v14 = vpop.f32.mrf.mxu1 }
 0x306   : > { %v1763_v15 = vadd.f32 %v2345_v54, %v1618_v12  ;;  %v2268_v16 = vadd.f32 %v2267_v14, %v2266_v11  ;;  %v2347_v18 = vpop.f32.mrf.mxu0 }
 0x307   : > { %v2269_v17 = vpop.f32.mrf.mxu1  ;;  %v2348_v21 = vadd.f32 %v2347_v18, %v2346_v13 }
 0x308   : > { %v1623_v19 = vadd.f32 %v2268_v16, %v3451_v29  ;;  %v2349_v22 = vpop.f32.mrf.mxu0  ;;  %2437 = vmatmul.mubr.msk.f32.gmra.mxu1 %vm1784_vm1, %v1763_v15 }
 0x309   : > { %v2270_v23 = vpop.f32.mrf.mxu1 }
 0x30a   : > { %v1768_v24 = vadd.f32 %v2348_v21, %v1623_v19  ;;  %v2271_v25 = vadd.f32 %v2270_v23, %v2269_v17  ;;  %v2350_v26 = vpop.f32.mrf.mxu0 }
 0x30b   : > { %v2351_v59 = vadd.f32 %v2350_v26, %v2349_v22 }
 0x30c   : > { %v1628_v27 = vadd.f32 %v2271_v25, %v3451_v29  ;;  %2439 = vmatprep.mubr.msk.f32.mxu1 %vm1784_vm1, %v1768_v24 }
 0x30e   : > { %v1773_v28 = vadd.f32 %v2351_v59, %v1628_v27 }
 0x310   : > { %2440 = vmatmul.mubr.msk.f32.gmra.mxu1 %vm1784_vm1, %v1773_v28 }
 0x368   : > { %v2420_v29 = vpop.f32.mrf.mxu0 }
 0x369   : > { %1979 = vst.msk [vmem:[%s3490_s29 + $0x8] sm:$0xff] %vm333_vm0, %v2420_v29 }
 0x36a   : > { %v1899_v30 = vpop.f32.mrf.mxu0 }
 0x36b   : > { %1978 = vst.msk [vmem:[%s3490_s29] sm:$0xff] %vm333_vm0, %v1899_v30 }
 0x370   : > { %v2423_v60 = vpop.f32.mrf.mxu0 }
 0x371   : > { %1981 = vst.msk [vmem:[%s3490_s29 + $0x18] sm:$0xff] %vm333_vm0, %v2423_v60 }
 0x372   : > { %v1909_v31 = vpop.f32.mrf.mxu0 }
 0x373   : > { %1980 = vst.msk [vmem:[%s3490_s29 + $0x10] sm:$0xff] %vm333_vm0, %v1909_v31 }
 0x388   : > { %v2426_v32 = vpop.f32.mrf.mxu0 }
 0x389   : > { %1983 = vst.msk [vmem:[%s3490_s29 + $0x28] sm:$0xff] %vm333_vm0, %v2426_v32 }
 0x38a   : > { %v1919_v61 = vpop.f32.mrf.mxu0 }
 0x38b   : > { %1982 = vst.msk [vmem:[%s3490_s29 + $0x20] sm:$0xff] %vm333_vm0, %v1919_v61 }
 0x390   : > { %v2429_v33 = vpop.f32.mrf.mxu1 }
 0x391   : > { %1985 = vst.msk [vmem:[%s3490_s29 + $0x38] sm:$0xff] %vm333_vm0, %v2429_v33 }
 0x392   : > { %v1929_v62 = vpop.f32.mrf.mxu1 }
 0x393   : > { %1984 = vst.msk [vmem:[%s3490_s29 + $0x30] sm:$0xff] %vm333_vm0, %v1929_v62 }
 0x3a8   : > { %v2432_v34 = vpop.f32.mrf.mxu1 }
 0x3a9   : > { %1987 = vst.msk [vmem:[%s3490_s29 + $0x48] sm:$0xff] %vm333_vm0, %v2432_v34 }
 0x3aa   : > { %v1939_v35 = vpop.f32.mrf.mxu1 }
 0x3ab   : > { %1986 = vst.msk [vmem:[%s3490_s29 + $0x40] sm:$0xff] %vm333_vm0, %v1939_v35 }
 0x3b0   : > { %v2435_v36 = vpop.f32.mrf.mxu1 }
 0x3b1   : > { %1989 = vst.msk [vmem:[%s3490_s29 + $0x58] sm:$0xff] %vm333_vm0, %v2435_v36 }
 0x3b2   : > { %v1949_v37 = vpop.f32.mrf.mxu1 }
 0x3b3   : > { %1988 = vst.msk [vmem:[%s3490_s29 + $0x50] sm:$0xff] %vm333_vm0, %v1949_v37 }
 0x3c8   : > { %v2438_v38 = vpop.f32.mrf.mxu1 }
 0x3c9   : > { %1991 = vst.msk [vmem:[%s3490_s29 + $0x68] sm:$0xff] %vm333_vm0, %v2438_v38 }
 0x3ca   : > { %v1959_v39 = vpop.f32.mrf.mxu1 }
 0x3cb   : > { %1990 = vst.msk [vmem:[%s3490_s29 + $0x60] sm:$0xff] %vm333_vm0, %v1959_v39 }
 0x3d0   : > { %v2441_v40 = vpop.f32.mrf.mxu1 }
 0x3d1   : > { %1993 = vst.msk [vmem:[%s3490_s29 + $0x78] sm:$0xff] %vm333_vm0, %v2441_v40 }
 0x3d2   : > { %v1969_v41 = vpop.f32.mrf.mxu1 }
 0x3d3   : > { %1992 = vst.msk [vmem:[%s3490_s29 + $0x70] sm:$0xff] %vm333_vm0, %v1969_v41 }
 0x3d4 PF: > { %s18_s27 = sadd.s32 1, %s2793_s27  }
 0x3d5   : > { %p15_p4 = scmp.ge.s32.totalorder %s18_s27, 4  }
 0x3d7   :  { %17 = sbr.rel (!%p15_p4) target bundleno = 1 (0x1), region = 82 }

</bundles_post_ra>
